<compile_context>
chip_gen: v5e
topology: v5e:2x2
jax: 0.10.0
libtpu: 0.0.40
codegen_flags: <defaults>
</compile_context>

<pallas_src>
import jax
import jax.numpy as jnp
import numpy as np
from jax.experimental import pallas as pl
from jax.experimental.pallas import tpu as pltpu

NEG_SLOPE = 0.01   # torch.nn.LeakyReLU default
EPS = 1e-5         # torch.nn.InstanceNorm2d default


def _leaky(v):
    return jnp.where(v >= 0, v, NEG_SLOPE * v)


def _block_resnet_kernel(x_ref, bstat_ref, m1_ref, b1_ref, m2_ref, b2_ref,
                         o_ref, pad_ref):
    """All Block_ResNet layers fused in one kernel invocation.

    x_ref:     (H, W*C)          module input, lane-dense channels-last
    bstat_ref: (W*C, W*C) f32    channel-selection matrix / (H*W)
    m*_ref:    (L, 3*W*C, W*C)   bf16 block-Toeplitz conv weights (per layer)
    b*_ref:    (L, 1, W*C) f32   lane-tiled conv biases (per layer)
    o_ref:     (H, W*C)          module output
    pad_ref:   (H+2, W*C) f32    vertically zero-padded activation scratch
    """
    H, WC = o_ref.shape
    L = m1_ref.shape[0]

    # Zero only the two vertical-halo rows, once for the whole module; the
    # interior rows are rewritten before every conv, the halo stays zero.
    pad_ref[0:1, :] = jnp.zeros((1, WC), jnp.float32)
    pad_ref[H + 1:H + 2, :] = jnp.zeros((1, WC), jnp.float32)

    bstat = bstat_ref[...]          # (WC, WC): [w*C+ci, w'*C+co] = (ci==co)/(H*W)

    def inorm(v):
        # Per-channel InstanceNorm over (H, W) in the lane-dense (H, W*C) layout.
        # The grouped-over-w lane reduction and the per-channel broadcast are one
        # tiny MXU matmul against `bstat` (MXU is idle, XLU/VPU are the hot slots).
        s1 = jnp.sum(v, axis=0, keepdims=True)                          # (1, WC)
        mean = jnp.dot(s1, bstat, preferred_element_type=jnp.float32)   # (1, WC)
        d = v - mean
        s2 = jnp.sum(d * d, axis=0, keepdims=True)
        var = jnp.dot(s2, bstat, preferred_element_type=jnp.float32)
        return d * jax.lax.rsqrt(var + EPS)

    def conv3x3(a, m, b):
        # a: (H, WC) f32 activation
        # m: (3*WC, WC) bf16 block-Toeplitz weight (dy stacked on the K axis,
        #    dx taps and horizontal zero padding baked into the matrix)
        # b: (1, WC) f32 lane-tiled bias
        pad_ref[1:H + 1, :] = a                                  # interior rewrite
        pv = jnp.concatenate([pad_ref[0:H, :],                   # rows h-1 (dy=0)
                              pad_ref[1:H + 1, :],               # rows h   (dy=1)
                              pad_ref[2:H + 2, :]], axis=-1)     # rows h+1 (dy=2)
        return jnp.dot(pv.astype(m.dtype), m,
                       preferred_element_type=jnp.float32) + b   # (H, WC)

    # InstanceNorm -> LeakyReLU -> conv1 -> InstanceNorm -> LeakyReLU -> conv2
    # -> +residual -> LeakyReLU   (matches Block_ResNet_pre.forward)
    a = x_ref[...].astype(jnp.float32)
    for l in range(L):               # L is small & static -> fully unrolled
        a1 = _leaky(inorm(a))
        h1 = conv3x3(a1, m1_ref[l], b1_ref[l])
        a2 = _leaky(inorm(h1))
        h2 = conv3x3(a2, m2_ref[l], b2_ref[l])
        a = _leaky(h2 + a)
    o_ref[...] = a.astype(o_ref.dtype)


def block_resnet_module(x, bstat, m1s, b1s, m2s, b2s):
    """x: (H, W, C); bstat: (W*C, W*C) f32; m*s: (L, 3*W*C, W*C) bf16;
    b*s: (L, 1, W*C) f32.  Runs all L Block_ResNet layers fused."""
    H, W, C = x.shape
    WC = W * C
    L, K, N = m1s.shape
    assert K == 3 * WC and N == WC and bstat.shape == (WC, WC)

    x2 = x.reshape(H, WC)            # lane-dense view (free host-side reshape)

    out2 = pl.pallas_call(
        _block_resnet_kernel,
        out_shape=jax.ShapeDtypeStruct((H, WC), x.dtype),
        grid_spec=pltpu.PrefetchScalarGridSpec(
            num_scalar_prefetch=0,
            grid=(1,),                                   # one step: whole module
            in_specs=[
                pl.BlockSpec((H, WC), lambda i: (0, 0)),          # input
                pl.BlockSpec((WC, WC), lambda i: (0, 0)),         # stat matrix
                pl.BlockSpec((L, 3 * WC, WC), lambda i: (0, 0, 0)),  # conv1 W
                pl.BlockSpec((L, 1, WC), lambda i: (0, 0, 0)),       # conv1 b
                pl.BlockSpec((L, 3 * WC, WC), lambda i: (0, 0, 0)),  # conv2 W
                pl.BlockSpec((L, 1, WC), lambda i: (0, 0, 0)),       # conv2 b
            ],
            out_specs=pl.BlockSpec((H, WC), lambda i: (0, 0)),
            scratch_shapes=[pltpu.VMEM((H + 2, WC), jnp.float32)],  # pad scratch
        ),
        compiler_params=pltpu.CompilerParams(
            dimension_semantics=("arbitrary",),
            vmem_limit_bytes=32 * 1024 * 1024),
    )(x2, bstat, m1s, b1s, m2s, b2s)
    return out2.reshape(H, W, C)


# ----------------------- host-side weight repacking ------------------------
def pack_toeplitz(w_hwio, W):
    """(3,3,C,C) HWIO conv weight -> (3*W*C, W*C) block-Toeplitz matrix M with
    M[dy*W*C + w_in*C + ci, w*C + co] = w_hwio[dy, w_in-w+1, ci, co] (else 0),
    so a SAME 3x3 conv in the lane-dense layout is `concat(dy slabs) @ M`."""
    w_hwio = np.asarray(w_hwio, np.float32)
    C = w_hwio.shape[-1]
    WC = W * C
    M = np.zeros((3 * WC, WC), np.float32)
    for dy in range(3):
        for dx in range(3):
            blk = w_hwio[dy, dx]                       # (C_in, C_out)
            for w in range(W):
                w_in = w + dx - 1
                if 0 <= w_in < W:
                    M[dy * WC + w_in * C: dy * WC + (w_in + 1) * C,
                      w * C: (w + 1) * C] = blk
    return M


def build_stat_matrix(H, W, C):
    # [w*C+ci, w'*C+co] = (ci == co) / (H*W): one matmul does the grouped lane
    # reduction over w plus the per-channel mean/var broadcast.
    return np.tile(np.eye(C, dtype=np.float32), (W, W)) / float(H * W)


# ----------------------- pure-JAX reference (for checking) -----------------
def _ref_layer(x, w_hwio1, bias1, w_hwio2, bias2):
    def inorm(v):
        m = v.mean(axis=(0, 1), keepdims=True)
        var = ((v - m) ** 2).mean(axis=(0, 1), keepdims=True)
        return (v - m) / jnp.sqrt(var + EPS)

    def conv(v, w, b):
        out = jax.lax.conv_general_dilated(
            v[None], w, window_strides=(1, 1), padding="SAME",
            dimension_numbers=("NHWC", "HWIO", "NHWC"))[0]
        return out + b

    a1 = _leaky(inorm(x))
    h1 = conv(a1, w_hwio1, bias1)
    a2 = _leaky(inorm(h1))
    h2 = conv(a2, w_hwio2, bias2)
    return _leaky(h2 + x)


if __name__ == "__main__":
    H, W, C = 16, 16, 8          # d_module = 8
    NUM_LAYERS = 2

    key = jax.random.PRNGKey(0)
    key, xk = jax.random.split(key)
    x = jax.random.normal(xk, (H, W, C), jnp.float32)

    # Deterministic synthetic parameters (Conv2d-style uniform init), HWIO layout.
    # Conv weights are rounded to bf16 (the kernel uses bf16 MXU operands); the
    # reference uses the SAME rounded weights, so only in-kernel activation
    # rounding (bf16 matmul inputs, f32 accumulation) differs.
    bound = 1.0 / np.sqrt(9 * C)
    m1_l, b1_l, m2_l, b2_l, params_ref = [], [], [], [], []
    for _ in range(NUM_LAYERS):
        key, k1, k2, k3, k4 = jax.random.split(key, 5)
        w1 = jax.random.uniform(k1, (3, 3, C, C), jnp.float32, -bound, bound)
        b1 = jax.random.uniform(k2, (C,), jnp.float32, -bound, bound)
        w2 = jax.random.uniform(k3, (3, 3, C, C), jnp.float32, -bound, bound)
        b2 = jax.random.uniform(k4, (C,), jnp.float32, -bound, bound)
        w1 = w1.astype(jnp.bfloat16).astype(jnp.float32)
        w2 = w2.astype(jnp.bfloat16).astype(jnp.float32)
        params_ref.append((w1, b1, w2, b2))
        m1_l.append(pack_toeplitz(w1, W))
        m2_l.append(pack_toeplitz(w2, W))
        b1_l.append(np.tile(np.asarray(b1), W).reshape(1, W * C))
        b2_l.append(np.tile(np.asarray(b2), W).reshape(1, W * C))

    m1s = jnp.asarray(np.stack(m1_l), jnp.bfloat16)   # exact: already bf16 values
    m2s = jnp.asarray(np.stack(m2_l), jnp.bfloat16)
    b1s = jnp.asarray(np.stack(b1_l), jnp.float32)
    b2s = jnp.asarray(np.stack(b2_l), jnp.float32)
    bstat = jnp.asarray(build_stat_matrix(H, W, C))

    out = block_resnet_module(x, bstat, m1s, b1s, m2s, b2s)
    out = jax.block_until_ready(out)

    ref = x
    for (w1, b1, w2, b2) in params_ref:
        ref = _ref_layer(ref, w1, b1, w2, b2)

    # Tolerance accounts for bf16 rounding of the conv matmul inputs (weights are
    # identical bf16 values in kernel and reference; accumulation is f32).
    np.testing.assert_allclose(np.asarray(out), np.asarray(ref),
                               rtol=1e-2, atol=1e-2)
    print("KERNEL_OK")
</pallas_src>

<mosaic_0001>
module attributes {stable_mosaic.version = 11 : i64} {
  func.func @_block_resnet_kernel(%arg0: i32, %arg1: memref<16x128xf32, #tpu.memory_space<vmem>>, %arg2: memref<128x128xf32, #tpu.memory_space<vmem>>, %arg3: memref<2x384x128xbf16, #tpu.memory_space<vmem>>, %arg4: memref<2x1x128xf32, #tpu.memory_space<vmem>>, %arg5: memref<2x384x128xbf16, #tpu.memory_space<vmem>>, %arg6: memref<2x1x128xf32, #tpu.memory_space<vmem>>, %arg7: memref<16x128xf32, #tpu.memory_space<vmem>>, %arg8: memref<18x128xf32, #tpu.memory_space<vmem>>) attributes {dimension_semantics = [#tpu.dimension_semantics<arbitrary>], iteration_bounds = array<i64: 1>, scalar_prefetch = 0 : i64, scratch_operands = 1 : i64, tpu.core_type = #tpu.core_type<tc>, window_params = [{pipeline_mode = #tpu.pipeline_mode<synchronous>, transform_indices = @transform_0, window_bounds = array<i64: 16, 128>}, {pipeline_mode = #tpu.pipeline_mode<synchronous>, transform_indices = @transform_1, window_bounds = array<i64: 128, 128>}, {pipeline_mode = #tpu.pipeline_mode<synchronous>, transform_indices = @transform_2, window_bounds = array<i64: 2, 384, 128>}, {pipeline_mode = #tpu.pipeline_mode<synchronous>, transform_indices = @transform_3, window_bounds = array<i64: 2, 1, 128>}, {pipeline_mode = #tpu.pipeline_mode<synchronous>, transform_indices = @transform_4, window_bounds = array<i64: 2, 384, 128>}, {pipeline_mode = #tpu.pipeline_mode<synchronous>, transform_indices = @transform_5, window_bounds = array<i64: 2, 1, 128>}, {pipeline_mode = #tpu.pipeline_mode<synchronous>, transform_indices = @transform_6, window_bounds = array<i64: 16, 128>}]} {
    %cst = arith.constant 0.000000e+00 : f32
    %0 = vector.broadcast %cst : f32 to vector<1x128xf32>
    %c0 = arith.constant 0 : index
    %c0_0 = arith.constant 0 : index
    %1 = vector.load %arg8[%c0, %c0_0] : memref<18x128xf32, #tpu.memory_space<vmem>>, vector<1x128xf32>
    tpu.vector_store %arg8[%c0, %c0_0], %0 {strides = array<i32>} : memref<18x128xf32, #tpu.memory_space<vmem>>, vector<1x128xf32>,
    %cst_1 = arith.constant 0.000000e+00 : f32
    %2 = vector.broadcast %cst_1 : f32 to vector<1x128xf32>
    %c17 = arith.constant 17 : index
    %c0_2 = arith.constant 0 : index
    %3 = vector.load %arg8[%c17, %c0_2] : memref<18x128xf32, #tpu.memory_space<vmem>>, vector<1x128xf32>
    tpu.vector_store %arg8[%c17, %c0_2], %2 {strides = array<i32>} : memref<18x128xf32, #tpu.memory_space<vmem>>, vector<1x128xf32>,
    %c0_3 = arith.constant 0 : index
    %c0_4 = arith.constant 0 : index
    %4 = vector.load %arg2[%c0_3, %c0_4] : memref<128x128xf32, #tpu.memory_space<vmem>>, vector<128x128xf32>
    %c0_5 = arith.constant 0 : index
    %c0_6 = arith.constant 0 : index
    %5 = vector.load %arg1[%c0_5, %c0_6] : memref<16x128xf32, #tpu.memory_space<vmem>>, vector<16x128xf32>
    %cst_7 = arith.constant dense<0.000000e+00> : vector<128xf32>
    %6 = vector.multi_reduction <add>, %5, %cst_7 [0] : vector<16x128xf32> to vector<128xf32>
    %7 = vector.shape_cast %6 : vector<128xf32> to vector<1x128xf32>
    %cst_8 = arith.constant dense<0.000000e+00> : vector<1x128xf32>
    %8 = tpu.matmul %7, %4, %cst_8 {dimension_numbers = #tpu.dot_dimension_numbers<[1], [0], [0], [1], [0, 0, 1, 1], [], []>} : vector<1x128xf32>, vector<128x128xf32>, vector<1x128xf32> -> vector<1x128xf32>
    %9 = vector.broadcast %8 : vector<1x128xf32> to vector<16x128xf32>
    %10 = arith.subf %5, %9 : vector<16x128xf32>
    %11 = arith.mulf %10, %10 : vector<16x128xf32>
    %cst_9 = arith.constant dense<0.000000e+00> : vector<128xf32>
    %12 = vector.multi_reduction <add>, %11, %cst_9 [0] : vector<16x128xf32> to vector<128xf32>
    %13 = vector.shape_cast %12 : vector<128xf32> to vector<1x128xf32>
    %cst_10 = arith.constant dense<0.000000e+00> : vector<1x128xf32>
    %14 = tpu.matmul %13, %4, %cst_10 {dimension_numbers = #tpu.dot_dimension_numbers<[1], [0], [0], [1], [0, 0, 1, 1], [], []>} : vector<1x128xf32>, vector<128x128xf32>, vector<1x128xf32> -> vector<1x128xf32>
    %cst_11 = arith.constant 9.99999974E-6 : f32
    %15 = vector.broadcast %cst_11 : f32 to vector<1x128xf32>
    %16 = arith.addf %14, %15 : vector<1x128xf32>
    %17 = math.rsqrt %16 : vector<1x128xf32>
    %18 = vector.broadcast %17 : vector<1x128xf32> to vector<16x128xf32>
    %19 = arith.mulf %10, %18 : vector<16x128xf32>
    %cst_12 = arith.constant 0.000000e+00 : f32
    %20 = vector.broadcast %cst_12 : f32 to vector<16x128xf32>
    %21 = arith.cmpf oge, %19, %20 : vector<16x128xf32>
    %cst_13 = arith.constant 0.00999999977 : f32
    %22 = vector.broadcast %cst_13 : f32 to vector<16x128xf32>
    %23 = arith.mulf %22, %19 : vector<16x128xf32>
    %24 = arith.select %21, %19, %23 : vector<16x128xi1>, vector<16x128xf32>
    %c0_14 = arith.constant 0 : index
    %c0_15 = arith.constant 0 : index
    %c0_16 = arith.constant 0 : index
    %25 = vector.load %arg3[%c0_14, %c0_15, %c0_16] : memref<2x384x128xbf16, #tpu.memory_space<vmem>>, vector<1x384x128xbf16>
    %26 = vector.shape_cast %25 : vector<1x384x128xbf16> to vector<384x128xbf16>
    %c0_17 = arith.constant 0 : index
    %c0_18 = arith.constant 0 : index
    %c0_19 = arith.constant 0 : index
    %27 = vector.load %arg4[%c0_17, %c0_18, %c0_19] : memref<2x1x128xf32, #tpu.memory_space<vmem>>, vector<1x1x128xf32>
    %28 = vector.shape_cast %27 : vector<1x1x128xf32> to vector<1x128xf32>
    %c1 = arith.constant 1 : index
    %c0_20 = arith.constant 0 : index
    %29 = vector.load %arg8[%c1, %c0_20] : memref<18x128xf32, #tpu.memory_space<vmem>>, vector<16x128xf32>
    tpu.vector_store %arg8[%c1, %c0_20], %24 {strides = array<i32>} : memref<18x128xf32, #tpu.memory_space<vmem>>, vector<16x128xf32>,
    %c0_21 = arith.constant 0 : index
    %c0_22 = arith.constant 0 : index
    %30 = vector.load %arg8[%c0_21, %c0_22] : memref<18x128xf32, #tpu.memory_space<vmem>>, vector<16x128xf32>
    %c1_23 = arith.constant 1 : index
    %c0_24 = arith.constant 0 : index
    %31 = vector.load %arg8[%c1_23, %c0_24] : memref<18x128xf32, #tpu.memory_space<vmem>>, vector<16x128xf32>
    %c2 = arith.constant 2 : index
    %c0_25 = arith.constant 0 : index
    %32 = vector.load %arg8[%c2, %c0_25] : memref<18x128xf32, #tpu.memory_space<vmem>>, vector<16x128xf32>
    %33 = tpu.concatenate %30, %31, %32 in 1 : vector<16x128xf32>, vector<16x128xf32>, vector<16x128xf32> -> vector<16x384xf32>
    %34 = arith.truncf %33 : vector<16x384xf32> to vector<16x384xbf16>
    %cst_26 = arith.constant dense<0.000000e+00> : vector<16x128xf32>
    %35 = tpu.matmul %34, %26, %cst_26 {dimension_numbers = #tpu.dot_dimension_numbers<[1], [0], [0], [1], [0, 0, 1, 1], [], []>} : vector<16x384xbf16>, vector<384x128xbf16>, vector<16x128xf32> -> vector<16x128xf32>
    %36 = vector.broadcast %28 : vector<1x128xf32> to vector<16x128xf32>
    %37 = arith.addf %35, %36 : vector<16x128xf32>
    %cst_27 = arith.constant dense<0.000000e+00> : vector<128xf32>
    %38 = vector.multi_reduction <add>, %37, %cst_27 [0] : vector<16x128xf32> to vector<128xf32>
    %39 = vector.shape_cast %38 : vector<128xf32> to vector<1x128xf32>
    %cst_28 = arith.constant dense<0.000000e+00> : vector<1x128xf32>
    %40 = tpu.matmul %39, %4, %cst_28 {dimension_numbers = #tpu.dot_dimension_numbers<[1], [0], [0], [1], [0, 0, 1, 1], [], []>} : vector<1x128xf32>, vector<128x128xf32>, vector<1x128xf32> -> vector<1x128xf32>
    %41 = vector.broadcast %40 : vector<1x128xf32> to vector<16x128xf32>
    %42 = arith.subf %37, %41 : vector<16x128xf32>
    %43 = arith.mulf %42, %42 : vector<16x128xf32>
    %cst_29 = arith.constant dense<0.000000e+00> : vector<128xf32>
    %44 = vector.multi_reduction <add>, %43, %cst_29 [0] : vector<16x128xf32> to vector<128xf32>
    %45 = vector.shape_cast %44 : vector<128xf32> to vector<1x128xf32>
    %cst_30 = arith.constant dense<0.000000e+00> : vector<1x128xf32>
    %46 = tpu.matmul %45, %4, %cst_30 {dimension_numbers = #tpu.dot_dimension_numbers<[1], [0], [0], [1], [0, 0, 1, 1], [], []>} : vector<1x128xf32>, vector<128x128xf32>, vector<1x128xf32> -> vector<1x128xf32>
    %cst_31 = arith.constant 9.99999974E-6 : f32
    %47 = vector.broadcast %cst_31 : f32 to vector<1x128xf32>
    %48 = arith.addf %46, %47 : vector<1x128xf32>
    %49 = math.rsqrt %48 : vector<1x128xf32>
    %50 = vector.broadcast %49 : vector<1x128xf32> to vector<16x128xf32>
    %51 = arith.mulf %42, %50 : vector<16x128xf32>
    %cst_32 = arith.constant 0.000000e+00 : f32
    %52 = vector.broadcast %cst_32 : f32 to vector<16x128xf32>
    %53 = arith.cmpf oge, %51, %52 : vector<16x128xf32>
    %cst_33 = arith.constant 0.00999999977 : f32
    %54 = vector.broadcast %cst_33 : f32 to vector<16x128xf32>
    %55 = arith.mulf %54, %51 : vector<16x128xf32>
    %56 = arith.select %53, %51, %55 : vector<16x128xi1>, vector<16x128xf32>
    %c0_34 = arith.constant 0 : index
    %c0_35 = arith.constant 0 : index
    %c0_36 = arith.constant 0 : index
    %57 = vector.load %arg5[%c0_34, %c0_35, %c0_36] : memref<2x384x128xbf16, #tpu.memory_space<vmem>>, vector<1x384x128xbf16>
    %58 = vector.shape_cast %57 : vector<1x384x128xbf16> to vector<384x128xbf16>
    %c0_37 = arith.constant 0 : index
    %c0_38 = arith.constant 0 : index
    %c0_39 = arith.constant 0 : index
    %59 = vector.load %arg6[%c0_37, %c0_38, %c0_39] : memref<2x1x128xf32, #tpu.memory_space<vmem>>, vector<1x1x128xf32>
    %60 = vector.shape_cast %59 : vector<1x1x128xf32> to vector<1x128xf32>
    %c1_40 = arith.constant 1 : index
    %c0_41 = arith.constant 0 : index
    %61 = vector.load %arg8[%c1_40, %c0_41] : memref<18x128xf32, #tpu.memory_space<vmem>>, vector<16x128xf32>
    tpu.vector_store %arg8[%c1_40, %c0_41], %56 {strides = array<i32>} : memref<18x128xf32, #tpu.memory_space<vmem>>, vector<16x128xf32>,
    %c0_42 = arith.constant 0 : index
    %c0_43 = arith.constant 0 : index
    %62 = vector.load %arg8[%c0_42, %c0_43] : memref<18x128xf32, #tpu.memory_space<vmem>>, vector<16x128xf32>
    %c1_44 = arith.constant 1 : index
    %c0_45 = arith.constant 0 : index
    %63 = vector.load %arg8[%c1_44, %c0_45] : memref<18x128xf32, #tpu.memory_space<vmem>>, vector<16x128xf32>
    %c2_46 = arith.constant 2 : index
    %c0_47 = arith.constant 0 : index
    %64 = vector.load %arg8[%c2_46, %c0_47] : memref<18x128xf32, #tpu.memory_space<vmem>>, vector<16x128xf32>
    %65 = tpu.concatenate %62, %63, %64 in 1 : vector<16x128xf32>, vector<16x128xf32>, vector<16x128xf32> -> vector<16x384xf32>
    %66 = arith.truncf %65 : vector<16x384xf32> to vector<16x384xbf16>
    %cst_48 = arith.constant dense<0.000000e+00> : vector<16x128xf32>
    %67 = tpu.matmul %66, %58, %cst_48 {dimension_numbers = #tpu.dot_dimension_numbers<[1], [0], [0], [1], [0, 0, 1, 1], [], []>} : vector<16x384xbf16>, vector<384x128xbf16>, vector<16x128xf32> -> vector<16x128xf32>
    %68 = vector.broadcast %60 : vector<1x128xf32> to vector<16x128xf32>
    %69 = arith.addf %67, %68 : vector<16x128xf32>
    %70 = arith.addf %69, %5 : vector<16x128xf32>
    %cst_49 = arith.constant 0.000000e+00 : f32
    %71 = vector.broadcast %cst_49 : f32 to vector<16x128xf32>
    %72 = arith.cmpf oge, %70, %71 : vector<16x128xf32>
    %cst_50 = arith.constant 0.00999999977 : f32
    %73 = vector.broadcast %cst_50 : f32 to vector<16x128xf32>
    %74 = arith.mulf %73, %70 : vector<16x128xf32>
    %75 = arith.select %72, %70, %74 : vector<16x128xi1>, vector<16x128xf32>
    %cst_51 = arith.constant dense<0.000000e+00> : vector<128xf32>
    %76 = vector.multi_reduction <add>, %75, %cst_51 [0] : vector<16x128xf32> to vector<128xf32>
    %77 = vector.shape_cast %76 : vector<128xf32> to vector<1x128xf32>
    %cst_52 = arith.constant dense<0.000000e+00> : vector<1x128xf32>
    %78 = tpu.matmul %77, %4, %cst_52 {dimension_numbers = #tpu.dot_dimension_numbers<[1], [0], [0], [1], [0, 0, 1, 1], [], []>} : vector<1x128xf32>, vector<128x128xf32>, vector<1x128xf32> -> vector<1x128xf32>
    %79 = vector.broadcast %78 : vector<1x128xf32> to vector<16x128xf32>
    %80 = arith.subf %75, %79 : vector<16x128xf32>
    %81 = arith.mulf %80, %80 : vector<16x128xf32>
    %cst_53 = arith.constant dense<0.000000e+00> : vector<128xf32>
    %82 = vector.multi_reduction <add>, %81, %cst_53 [0] : vector<16x128xf32> to vector<128xf32>
    %83 = vector.shape_cast %82 : vector<128xf32> to vector<1x128xf32>
    %cst_54 = arith.constant dense<0.000000e+00> : vector<1x128xf32>
    %84 = tpu.matmul %83, %4, %cst_54 {dimension_numbers = #tpu.dot_dimension_numbers<[1], [0], [0], [1], [0, 0, 1, 1], [], []>} : vector<1x128xf32>, vector<128x128xf32>, vector<1x128xf32> -> vector<1x128xf32>
    %cst_55 = arith.constant 9.99999974E-6 : f32
    %85 = vector.broadcast %cst_55 : f32 to vector<1x128xf32>
    %86 = arith.addf %84, %85 : vector<1x128xf32>
    %87 = math.rsqrt %86 : vector<1x128xf32>
    %88 = vector.broadcast %87 : vector<1x128xf32> to vector<16x128xf32>
    %89 = arith.mulf %80, %88 : vector<16x128xf32>
    %cst_56 = arith.constant 0.000000e+00 : f32
    %90 = vector.broadcast %cst_56 : f32 to vector<16x128xf32>
    %91 = arith.cmpf oge, %89, %90 : vector<16x128xf32>
    %cst_57 = arith.constant 0.00999999977 : f32
    %92 = vector.broadcast %cst_57 : f32 to vector<16x128xf32>
    %93 = arith.mulf %92, %89 : vector<16x128xf32>
    %94 = arith.select %91, %89, %93 : vector<16x128xi1>, vector<16x128xf32>
    %c1_58 = arith.constant 1 : index
    %c0_59 = arith.constant 0 : index
    %c0_60 = arith.constant 0 : index
    %95 = vector.load %arg3[%c1_58, %c0_59, %c0_60] : memref<2x384x128xbf16, #tpu.memory_space<vmem>>, vector<1x384x128xbf16>
    %96 = vector.shape_cast %95 : vector<1x384x128xbf16> to vector<384x128xbf16>
    %c1_61 = arith.constant 1 : index
    %c0_62 = arith.constant 0 : index
    %c0_63 = arith.constant 0 : index
    %97 = vector.load %arg4[%c1_61, %c0_62, %c0_63] : memref<2x1x128xf32, #tpu.memory_space<vmem>>, vector<1x1x128xf32>
    %98 = vector.shape_cast %97 : vector<1x1x128xf32> to vector<1x128xf32>
    %c1_64 = arith.constant 1 : index
    %c0_65 = arith.constant 0 : index
    %99 = vector.load %arg8[%c1_64, %c0_65] : memref<18x128xf32, #tpu.memory_space<vmem>>, vector<16x128xf32>
    tpu.vector_store %arg8[%c1_64, %c0_65], %94 {strides = array<i32>} : memref<18x128xf32, #tpu.memory_space<vmem>>, vector<16x128xf32>,
    %c0_66 = arith.constant 0 : index
    %c0_67 = arith.constant 0 : index
    %100 = vector.load %arg8[%c0_66, %c0_67] : memref<18x128xf32, #tpu.memory_space<vmem>>, vector<16x128xf32>
    %c1_68 = arith.constant 1 : index
    %c0_69 = arith.constant 0 : index
    %101 = vector.load %arg8[%c1_68, %c0_69] : memref<18x128xf32, #tpu.memory_space<vmem>>, vector<16x128xf32>
    %c2_70 = arith.constant 2 : index
    %c0_71 = arith.constant 0 : index
    %102 = vector.load %arg8[%c2_70, %c0_71] : memref<18x128xf32, #tpu.memory_space<vmem>>, vector<16x128xf32>
    %103 = tpu.concatenate %100, %101, %102 in 1 : vector<16x128xf32>, vector<16x128xf32>, vector<16x128xf32> -> vector<16x384xf32>
    %104 = arith.truncf %103 : vector<16x384xf32> to vector<16x384xbf16>
    %cst_72 = arith.constant dense<0.000000e+00> : vector<16x128xf32>
    %105 = tpu.matmul %104, %96, %cst_72 {dimension_numbers = #tpu.dot_dimension_numbers<[1], [0], [0], [1], [0, 0, 1, 1], [], []>} : vector<16x384xbf16>, vector<384x128xbf16>, vector<16x128xf32> -> vector<16x128xf32>
    %106 = vector.broadcast %98 : vector<1x128xf32> to vector<16x128xf32>
    %107 = arith.addf %105, %106 : vector<16x128xf32>
    %cst_73 = arith.constant dense<0.000000e+00> : vector<128xf32>
    %108 = vector.multi_reduction <add>, %107, %cst_73 [0] : vector<16x128xf32> to vector<128xf32>
    %109 = vector.shape_cast %108 : vector<128xf32> to vector<1x128xf32>
    %cst_74 = arith.constant dense<0.000000e+00> : vector<1x128xf32>
    %110 = tpu.matmul %109, %4, %cst_74 {dimension_numbers = #tpu.dot_dimension_numbers<[1], [0], [0], [1], [0, 0, 1, 1], [], []>} : vector<1x128xf32>, vector<128x128xf32>, vector<1x128xf32> -> vector<1x128xf32>
    %111 = vector.broadcast %110 : vector<1x128xf32> to vector<16x128xf32>
    %112 = arith.subf %107, %111 : vector<16x128xf32>
    %113 = arith.mulf %112, %112 : vector<16x128xf32>
    %cst_75 = arith.constant dense<0.000000e+00> : vector<128xf32>
    %114 = vector.multi_reduction <add>, %113, %cst_75 [0] : vector<16x128xf32> to vector<128xf32>
    %115 = vector.shape_cast %114 : vector<128xf32> to vector<1x128xf32>
    %cst_76 = arith.constant dense<0.000000e+00> : vector<1x128xf32>
    %116 = tpu.matmul %115, %4, %cst_76 {dimension_numbers = #tpu.dot_dimension_numbers<[1], [0], [0], [1], [0, 0, 1, 1], [], []>} : vector<1x128xf32>, vector<128x128xf32>, vector<1x128xf32> -> vector<1x128xf32>
    %cst_77 = arith.constant 9.99999974E-6 : f32
    %117 = vector.broadcast %cst_77 : f32 to vector<1x128xf32>
    %118 = arith.addf %116, %117 : vector<1x128xf32>
    %119 = math.rsqrt %118 : vector<1x128xf32>
    %120 = vector.broadcast %119 : vector<1x128xf32> to vector<16x128xf32>
    %121 = arith.mulf %112, %120 : vector<16x128xf32>
    %cst_78 = arith.constant 0.000000e+00 : f32
    %122 = vector.broadcast %cst_78 : f32 to vector<16x128xf32>
    %123 = arith.cmpf oge, %121, %122 : vector<16x128xf32>
    %cst_79 = arith.constant 0.00999999977 : f32
    %124 = vector.broadcast %cst_79 : f32 to vector<16x128xf32>
    %125 = arith.mulf %124, %121 : vector<16x128xf32>
    %126 = arith.select %123, %121, %125 : vector<16x128xi1>, vector<16x128xf32>
    %c1_80 = arith.constant 1 : index
    %c0_81 = arith.constant 0 : index
    %c0_82 = arith.constant 0 : index
    %127 = vector.load %arg5[%c1_80, %c0_81, %c0_82] : memref<2x384x128xbf16, #tpu.memory_space<vmem>>, vector<1x384x128xbf16>
    %128 = vector.shape_cast %127 : vector<1x384x128xbf16> to vector<384x128xbf16>
    %c1_83 = arith.constant 1 : index
    %c0_84 = arith.constant 0 : index
    %c0_85 = arith.constant 0 : index
    %129 = vector.load %arg6[%c1_83, %c0_84, %c0_85] : memref<2x1x128xf32, #tpu.memory_space<vmem>>, vector<1x1x128xf32>
    %130 = vector.shape_cast %129 : vector<1x1x128xf32> to vector<1x128xf32>
    %c1_86 = arith.constant 1 : index
    %c0_87 = arith.constant 0 : index
    %131 = vector.load %arg8[%c1_86, %c0_87] : memref<18x128xf32, #tpu.memory_space<vmem>>, vector<16x128xf32>
    tpu.vector_store %arg8[%c1_86, %c0_87], %126 {strides = array<i32>} : memref<18x128xf32, #tpu.memory_space<vmem>>, vector<16x128xf32>,
    %c0_88 = arith.constant 0 : index
    %c0_89 = arith.constant 0 : index
    %132 = vector.load %arg8[%c0_88, %c0_89] : memref<18x128xf32, #tpu.memory_space<vmem>>, vector<16x128xf32>
    %c1_90 = arith.constant 1 : index
    %c0_91 = arith.constant 0 : index
    %133 = vector.load %arg8[%c1_90, %c0_91] : memref<18x128xf32, #tpu.memory_space<vmem>>, vector<16x128xf32>
    %c2_92 = arith.constant 2 : index
    %c0_93 = arith.constant 0 : index
    %134 = vector.load %arg8[%c2_92, %c0_93] : memref<18x128xf32, #tpu.memory_space<vmem>>, vector<16x128xf32>
    %135 = tpu.concatenate %132, %133, %134 in 1 : vector<16x128xf32>, vector<16x128xf32>, vector<16x128xf32> -> vector<16x384xf32>
    %136 = arith.truncf %135 : vector<16x384xf32> to vector<16x384xbf16>
    %cst_94 = arith.constant dense<0.000000e+00> : vector<16x128xf32>
    %137 = tpu.matmul %136, %128, %cst_94 {dimension_numbers = #tpu.dot_dimension_numbers<[1], [0], [0], [1], [0, 0, 1, 1], [], []>} : vector<16x384xbf16>, vector<384x128xbf16>, vector<16x128xf32> -> vector<16x128xf32>
    %138 = vector.broadcast %130 : vector<1x128xf32> to vector<16x128xf32>
    %139 = arith.addf %137, %138 : vector<16x128xf32>
    %140 = arith.addf %139, %75 : vector<16x128xf32>
    %cst_95 = arith.constant 0.000000e+00 : f32
    %141 = vector.broadcast %cst_95 : f32 to vector<16x128xf32>
    %142 = arith.cmpf oge, %140, %141 : vector<16x128xf32>
    %cst_96 = arith.constant 0.00999999977 : f32
    %143 = vector.broadcast %cst_96 : f32 to vector<16x128xf32>
    %144 = arith.mulf %143, %140 : vector<16x128xf32>
    %145 = arith.select %142, %140, %144 : vector<16x128xi1>, vector<16x128xf32>
    %c0_97 = arith.constant 0 : index
    %c0_98 = arith.constant 0 : index
    %146 = vector.load %arg7[%c0_97, %c0_98] : memref<16x128xf32, #tpu.memory_space<vmem>>, vector<16x128xf32>
    tpu.vector_store %arg7[%c0_97, %c0_98], %145 {strides = array<i32>} : memref<16x128xf32, #tpu.memory_space<vmem>>, vector<16x128xf32>,
    return
  }
  func.func @transform_0(%arg0: i32) -> (i32, i32) {
    %c0_i32 = arith.constant 0 : i32
    %c0_i32_0 = arith.constant 0 : i32
    %c0_i32_1 = arith.constant 0 : i32
    return %c0_i32, %c0_i32_0 : i32, i32
  }
  func.func @transform_1(%arg0: i32) -> (i32, i32) {
    %c0_i32 = arith.constant 0 : i32
    %c0_i32_0 = arith.constant 0 : i32
    %c0_i32_1 = arith.constant 0 : i32
    return %c0_i32, %c0_i32_0 : i32, i32
  }
  func.func @transform_2(%arg0: i32) -> (i32, i32, i32) {
    %c0_i32 = arith.constant 0 : i32
    %c0_i32_0 = arith.constant 0 : i32
    %c0_i32_1 = arith.constant 0 : i32
    %c0_i32_2 = arith.constant 0 : i32
    return %c0_i32, %c0_i32_0, %c0_i32_1 : i32, i32, i32
  }
  func.func @transform_3(%arg0: i32) -> (i32, i32, i32) {
    %c0_i32 = arith.constant 0 : i32
    %c0_i32_0 = arith.constant 0 : i32
    %c0_i32_1 = arith.constant 0 : i32
    %c0_i32_2 = arith.constant 0 : i32
    return %c0_i32, %c0_i32_0, %c0_i32_1 : i32, i32, i32
  }
  func.func @transform_4(%arg0: i32) -> (i32, i32, i32) {
    %c0_i32 = arith.constant 0 : i32
    %c0_i32_0 = arith.constant 0 : i32
    %c0_i32_1 = arith.constant 0 : i32
    %c0_i32_2 = arith.constant 0 : i32
    return %c0_i32, %c0_i32_0, %c0_i32_1 : i32, i32, i32
  }
  func.func @transform_5(%arg0: i32) -> (i32, i32, i32) {
    %c0_i32 = arith.constant 0 : i32
    %c0_i32_0 = arith.constant 0 : i32
    %c0_i32_1 = arith.constant 0 : i32
    %c0_i32_2 = arith.constant 0 : i32
    return %c0_i32, %c0_i32_0, %c0_i32_1 : i32, i32, i32
  }
  func.func @transform_6(%arg0: i32) -> (i32, i32) {
    %c0_i32 = arith.constant 0 : i32
    %c0_i32_0 = arith.constant 0 : i32
    %c0_i32_1 = arith.constant 0 : i32
    return %c0_i32, %c0_i32_0 : i32, i32
  }
}

</mosaic_0001>

<bundles_post_ra>
// kernel: tpu_custom_call.1
= control target key start
LH: loop header
LB: loop body
LE: loop exit
PB: predicated region body
PF: predicated region fallthrough
CT: control target
= control target key end

     0   :  { %11 = vsyncpa [#allocation4], 0  ;;  %s2391_s0 = inlined_call_operand.hbm [shape: f32[16,128], index: 0, kind: input, shape index: {}]   ;;  %s2392_s1 = inlined_call_operand.hbm [shape: f32[128,128], index: 1, kind: input, shape index: {}]   ;;  %s2393_s2 = inlined_call_operand.hbm [shape: bf16[2,384,128], index: 2, kind: input, shape index: {}]   ;;  %s2394_s3 = inlined_call_operand.vmem [shape: f32[2,1,128], index: 3, kind: input, shape index: {}]   ;;  %s2395_s4 = inlined_call_operand.hbm [shape: bf16[2,384,128], index: 4, kind: input, shape index: {}]   ;;  %s2396_s5 = inlined_call_operand.vmem [shape: f32[2,1,128], index: 5, kind: input, shape index: {}]   ;;  %s2397_s6 = inlined_call_operand.hbm [shape: f32[16,128], index: 6, kind: output, shape index: {}]  }
   0x1   :  { %12 = vsyncpa [#allocation7], 0 }
   0x2   :  { %13 = vsyncpa [#allocation10], 0 }
   0x3   :  { %14 = vsyncpa [#allocation5], 0  ;;  %s32_s23 = sshll.u32 %s2392_s1, 4  ;;  %s2090_s24 = smov [#allocation6]   ;;  %s33_s23 = int_to_ptr.hbm [resolvable:$true] %s32_s23 }
   0x4   :  { %s34_s25 = sshll.u32 %s2090_s24, 4  ;;  %s19_s28 = sshll.u32 %s2391_s0, 4  ;;  %s35_s25 = int_to_ptr.vmem [resolvable:$true] %s34_s25  ;;  %s20_s28 = int_to_ptr.hbm [resolvable:$true] %s19_s28 }
   0x5   :  { %s2091_s29 = smov 128   ;;  %s2092_s30 = smov 8  }
   0x6   :  { %40 = dma.hbm_to_vmem [thread:$0]  %s33_s23, 2048, %s35_s25, [#allocation7], %s2091_s29, %s2091_s29, %s2092_s30  }
   0x7   :  { %s2093_s7 = smov [#allocation3]   ;;  %s45_s1 = sshll.u32 %s2393_s2, 4  ;;  %s46_s1 = int_to_ptr.hbm [resolvable:$true] %s45_s1 }
   0x8   :  { %s21_s8 = sshll.u32 %s2093_s7, 4  ;;  %s2094_s0 = smov [#allocation8]   ;;  %s22_s8 = int_to_ptr.vmem [resolvable:$true] %s21_s8 }
   0x9   :  { %27 = dma.hbm_to_vmem [thread:$0]  %s20_s28, 256, %s22_s8, [#allocation4], %s2091_s29, %s2091_s29, %s2092_s30  }
   0xa   :  { %s47_s11 = sshll.u32 %s2094_s0, 4  ;;  %s60_s14 = sshll.u32 %s2395_s4, 4  ;;  %s48_s11 = int_to_ptr.vmem [resolvable:$true] %s47_s11  ;;  %s61_s14 = int_to_ptr.hbm [resolvable:$true] %s60_s14 }
   0xb   :  { %s2095_s15 = smov 64   ;;  %s2096_s16 = smov 4  }
   0xc   :  { %53 = dma.hbm_to_vmem [thread:$0]  %s46_s1, 6144, %s48_s11, [#allocation7], %s2095_s15, %s2095_s15, %s2096_s16  }
   0xd   :  { %s2097_s17 = smov [#allocation9]  }
   0xe   :  { %s62_s18 = sshll.u32 %s2097_s17, 4  ;;  %s63_s18 = int_to_ptr.vmem [resolvable:$true] %s62_s18 }
   0xf   :  { %68 = dma.hbm_to_vmem [thread:$0]  %s61_s14, 6144, %s63_s18, [#allocation10], %s2095_s15, %s2095_s15, %s2096_s16  }
  0x10   :  { %2082 = dma.done.wait [#allocation4], 256  }
  0x11   :  { %2083 = vsyncadd [#allocation4], 4294967040 }
  0x12   :  { %2084 = dma.done.wait [#allocation7], 8192  }
  0x13   :  { %2085 = vsyncadd [#allocation7], 4294959104 }
  0x14   :  { %2086 = dma.done.wait [#allocation10], 6144  }
  0x15   :  { %2087 = vsyncadd [#allocation10], 4294961152  ;;  %v2153_v0 = vld [vmem:[#allocation6 + $0x78] sm:$0xff]  ;;  %v2155_v1 = vld [vmem:[#allocation6 + $0x70] sm:$0xff]  ;;  %v2098_v60 = vmov 0.0   ;;  %s1443_s27 = sshll.u32 %s2397_s6, 4  ;;  %s1444_s27 = int_to_ptr.hbm [resolvable:$true] %s1443_s27 }
  0x16   :  { %114 = vmatpush.msra.mxu0 %v2153_v0  ;;  %146 = vmatpush.msra.mxu1 %v2153_v0  ;;  %v2159_v2 = vld [vmem:[#allocation6 + $0x68] sm:$0xff]  ;;  %v2163_v3 = vld [vmem:[#allocation6 + $0x60] sm:$0xff]  ;;  %v2166_v4 = vld [vmem:[#allocation6 + $0x58] sm:$0xff]  ;;  %87 = vst [vmem:[#allocation2] sm:$0x1] %v2098_v60 }
  0x17   :  { %v2168_v5 = vld [vmem:[#allocation3] sm:$0xff]  ;;  %v2170_v6 = vld [vmem:[#allocation3 + $0x8] sm:$0xff]  ;;  %v2181_v10 = vld [vmem:[#allocation6 + $0x48] sm:$0xff]  ;;  %88 = vst [vmem:[#allocation2 + $0x11] sm:$0x1] %v2098_v60 }
  0x18   :  { %115 = vmatpush.msra.mxu0 %v2155_v1  ;;  %147 = vmatpush.msra.mxu1 %v2155_v1  ;;  %v107_v7 = vadd.f32 %v2170_v6, %v2168_v5  ;;  %v2177_v8 = vld [vmem:[#allocation6 + $0x50] sm:$0xff]  ;;  %v2185_v11 = vld [vmem:[#allocation6 + $0x40] sm:$0xff]  ;;  %v2189_v13 = vld [vmem:[#allocation6 + $0x38] sm:$0xff] }
  0x19   :  { %v2193_v14 = vld [vmem:[#allocation6 + $0x30] sm:$0xff]  ;;  %v2197_v16 = vld [vmem:[#allocation6 + $0x28] sm:$0xff]  ;;  %v2201_v17 = vld [vmem:[#allocation6 + $0x20] sm:$0xff] }
  0x1a   :  { %116 = vmatpush.msra.mxu0 %v2159_v2  ;;  %148 = vmatpush.msra.mxu1 %v2159_v2  ;;  %v108_v9 = vrot.slane %v107_v7, 4  ;;  %v2205_v19 = vld [vmem:[#allocation6 + $0x18] sm:$0xff]  ;;  %v2209_v20 = vld [vmem:[#allocation6 + $0x10] sm:$0xff]  ;;  %v2213_v22 = vld [vmem:[#allocation6 + $0x8] sm:$0xff] }
  0x1b   :  { %v2217_v23 = vld [vmem:[#allocation6] sm:$0xff]  ;;  %v1859_v38 = vld [vmem:[#allocation8 + $0x78] sm:$0xff]  ;;  %v1858_v39 = vld [vmem:[#allocation8 + $0x70] sm:$0xff] }
  0x1c   :  { %117 = vmatpush.msra.mxu0 %v2163_v3  ;;  %149 = vmatpush.msra.mxu1 %v2163_v3  ;;  %v109_v12 = vadd.f32 %v108_v9, %v107_v7  ;;  %v1851_v40 = vld [vmem:[#allocation8 + $0x38] sm:$0xff]  ;;  %v1857_v42 = vld [vmem:[#allocation8 + $0x68] sm:$0xff]  ;;  %v1850_v43 = vld [vmem:[#allocation8 + $0x30] sm:$0xff] }
  0x1d   :  { %406 = vmatpush.bf16.msra.mxu3 %v1859_v38  ;;  %v1867_v41 = vld [vmem:[#allocation8 + $0xb8] sm:$0xff]  ;;  %392 = vmatpush.bf16.msra.mxu2 %v1851_v40  ;;  %v1866_v44 = vld [vmem:[#allocation8 + $0xb0] sm:$0xff]  ;;  %v1856_v45 = vld [vmem:[#allocation8 + $0x60] sm:$0xff] }
  0x1e   :  { %118 = vmatpush.msra.mxu0 %v2166_v4  ;;  %150 = vmatpush.msra.mxu1 %v2166_v4  ;;  %v110_v15 = vrot.slane %v109_v12, 2  ;;  %v1849_v46 = vld [vmem:[#allocation8 + $0x28] sm:$0xff]  ;;  %v1855_v48 = vld [vmem:[#allocation8 + $0x58] sm:$0xff]  ;;  %v1848_v49 = vld [vmem:[#allocation8 + $0x20] sm:$0xff] }
  0x1f   :  { %v1865_v47 = vld [vmem:[#allocation8 + $0xa8] sm:$0xff]  ;;  %v1864_v50 = vld [vmem:[#allocation8 + $0xa0] sm:$0xff]  ;;  %v1854_v51 = vld [vmem:[#allocation8 + $0x50] sm:$0xff] }
  0x20   :  { %119 = vmatpush.msra.mxu0 %v2177_v8  ;;  %151 = vmatpush.msra.mxu1 %v2177_v8  ;;  %v111_v18 = vadd.f32 %v110_v15, %v109_v12  ;;  %v1847_v52 = vld [vmem:[#allocation8 + $0x18] sm:$0xff]  ;;  %v1853_v54 = vld [vmem:[#allocation8 + $0x48] sm:$0xff]  ;;  %v1846_v55 = vld [vmem:[#allocation8 + $0x10] sm:$0xff] }
  0x21   :  { %407 = vmatpush.bf16.msra.mxu3 %v1858_v39  ;;  %393 = vmatpush.bf16.msra.mxu2 %v1850_v43  ;;  %v1863_v53 = vld [vmem:[#allocation8 + $0x98] sm:$0xff]  ;;  %v1862_v56 = vld [vmem:[#allocation8 + $0x90] sm:$0xff]  ;;  %v1852_v57 = vld [vmem:[#allocation8 + $0x40] sm:$0xff] }
  0x22   :  { %120 = vmatpush.msra.mxu0 %v2181_v10  ;;  %152 = vmatpush.msra.mxu1 %v2181_v10  ;;  %v112_v21 = vrot.slane %v111_v18, 1  ;;  %v1845_v58 = vld [vmem:[#allocation8 + $0x8] sm:$0xff]  ;;  %v1844_v62 = vld [vmem:[#allocation8] sm:$0xff] }
  0x23   :  { %v1861_v59 = vld [vmem:[#allocation8 + $0x88] sm:$0xff]  ;;  %v1860_v63 = vld [vmem:[#allocation8 + $0x80] sm:$0xff] }
  0x24   :  { %121 = vmatpush.msra.mxu0 %v2185_v11  ;;  %153 = vmatpush.msra.mxu1 %v2185_v11  ;;  %v113_v24 = vadd.f32 %v112_v21, %v111_v18 }
  0x25   :  { %408 = vmatpush.bf16.msra.mxu3 %v1857_v42  ;;  %394 = vmatpush.bf16.msra.mxu2 %v1849_v46  ;;  %v1950_v42 = vld [vmem:[%s2394_s3] ss:$0 sm:$0xff] }
  0x26   :  { %122 = vmatpush.msra.mxu0 %v2189_v13  ;;  %154 = vmatpush.msra.mxu1 %v2189_v13 }
  0x28   :  { %123 = vmatpush.msra.mxu0 %v2193_v14  ;;  %155 = vmatpush.msra.mxu1 %v2193_v14 }
  0x29   :  { %409 = vmatpush.bf16.msra.mxu3 %v1856_v45  ;;  %395 = vmatpush.bf16.msra.mxu2 %v1848_v49 }
  0x2a   :  { %124 = vmatpush.msra.mxu0 %v2197_v16  ;;  %156 = vmatpush.msra.mxu1 %v2197_v16 }
  0x2c   :  { %125 = vmatpush.msra.mxu0 %v2201_v17  ;;  %157 = vmatpush.msra.mxu1 %v2201_v17 }
  0x2d   :  { %410 = vmatpush.bf16.msra.mxu3 %v1855_v48  ;;  %396 = vmatpush.bf16.msra.mxu2 %v1847_v52 }
  0x2e   :  { %126 = vmatpush.msra.mxu0 %v2205_v19  ;;  %158 = vmatpush.msra.mxu1 %v2205_v19 }
  0x30   :  { %127 = vmatpush.msra.mxu0 %v2209_v20  ;;  %159 = vmatpush.msra.mxu1 %v2209_v20 }
  0x31   :  { %411 = vmatpush.bf16.msra.mxu3 %v1854_v51  ;;  %397 = vmatpush.bf16.msra.mxu2 %v1846_v55 }
  0x32   :  { %128 = vmatpush.msra.mxu0 %v2213_v22  ;;  %160 = vmatpush.msra.mxu1 %v2213_v22 }
  0x34   :  { %129 = vmatpush.msra.mxu0 %v2217_v23  ;;  %161 = vmatpush.msra.mxu1 %v2217_v23 }
  0x35   :  { %130 = vmatmul.f32.vlgmr.msra.gmra.mxu0 %v113_v24  ;;  %412 = vmatpush.bf16.msra.mxu3 %v1853_v54 }
  0x36   :  { %441 = vmatpush.msrb.mxu1 %v2153_v0  ;;  %420 = vmatpush.bf16.msrb.mxu0 %v1867_v41 }
  0x37   :  { %398 = vmatpush.bf16.msra.mxu2 %v1845_v58 }
  0x38   :  { %442 = vmatpush.msrb.mxu1 %v2155_v1 }
  0x39   :  { %413 = vmatpush.bf16.msra.mxu3 %v1852_v57 }
  0x3a   :  { %443 = vmatpush.msrb.mxu1 %v2159_v2  ;;  %421 = vmatpush.bf16.msrb.mxu0 %v1866_v44 }
  0x3b   :  { %399 = vmatpush.bf16.msra.mxu2 %v1844_v62 }
  0x3c   :  { %444 = vmatpush.msrb.mxu1 %v2163_v3 }
  0x3e   :  { %445 = vmatpush.msrb.mxu1 %v2166_v4  ;;  %422 = vmatpush.bf16.msrb.mxu0 %v1865_v47 }
  0x3f   :  { %473 = vmatpush.msrb.mxu2 %v2153_v0 }
  0x40   :  { %446 = vmatpush.msrb.mxu1 %v2177_v8 }
  0x41   :  { %474 = vmatpush.msrb.mxu2 %v2155_v1 }
  0x42   :  { %447 = vmatpush.msrb.mxu1 %v2181_v10  ;;  %423 = vmatpush.bf16.msrb.mxu0 %v1864_v50 }
  0x43   :  { %475 = vmatpush.msrb.mxu2 %v2159_v2 }
  0x44   :  { %448 = vmatpush.msrb.mxu1 %v2185_v11 }
  0x45   :  { %476 = vmatpush.msrb.mxu2 %v2163_v3 }
  0x46   :  { %449 = vmatpush.msrb.mxu1 %v2189_v13  ;;  %424 = vmatpush.bf16.msrb.mxu0 %v1863_v53 }
  0x47   :  { %477 = vmatpush.msrb.mxu2 %v2166_v4 }
  0x48   :  { %450 = vmatpush.msrb.mxu1 %v2193_v14 }
  0x49   :  { %478 = vmatpush.msrb.mxu2 %v2177_v8 }
  0x4a   :  { %451 = vmatpush.msrb.mxu1 %v2197_v16  ;;  %425 = vmatpush.bf16.msrb.mxu0 %v1862_v56 }
  0x4b   :  { %479 = vmatpush.msrb.mxu2 %v2181_v10 }
  0x4c   :  { %452 = vmatpush.msrb.mxu1 %v2201_v17 }
  0x4d   :  { %480 = vmatpush.msrb.mxu2 %v2185_v11 }
  0x4e   :  { %453 = vmatpush.msrb.mxu1 %v2205_v19  ;;  %426 = vmatpush.bf16.msrb.mxu0 %v1861_v59 }
  0x4f   :  { %481 = vmatpush.msrb.mxu2 %v2189_v13 }
  0x50   :  { %454 = vmatpush.msrb.mxu1 %v2209_v20 }
  0x51   :  { %482 = vmatpush.msrb.mxu2 %v2193_v14 }
  0x52   :  { %455 = vmatpush.msrb.mxu1 %v2213_v22  ;;  %427 = vmatpush.bf16.msrb.mxu0 %v1860_v63 }
  0x53   :  { %483 = vmatpush.msrb.mxu2 %v2197_v16 }
  0x54   :  { %456 = vmatpush.msrb.mxu1 %v2217_v23 }
  0x55   :  { %484 = vmatpush.msrb.mxu2 %v2201_v17 }
  0x57   :  { %485 = vmatpush.msrb.mxu2 %v2205_v19 }
  0x59   :  { %486 = vmatpush.msrb.mxu2 %v2209_v20 }
  0x5b   :  { %487 = vmatpush.msrb.mxu2 %v2213_v22 }
  0x5d   :  { %488 = vmatpush.msrb.mxu2 %v2217_v23 }
  0xb2   :  { %v131_v25 = vpop.f32.mrf.mxu0 }
  0xb3   :  { %v134_v26 = vperm.slane %v131_v25, 0 }
  0xb5   :  { %v2240_v27 = vsub.f32 %v2168_v5, %v134_v26  ;;  %v2243_v28 = vsub.f32 %v2170_v6, %v134_v26 }
  0xb7   :  { %v137_v29 = vmul.f32 %v2240_v27, %v2240_v27  ;;  %v138_v30 = vmul.f32 %v2243_v28, %v2243_v28 }
  0xb9   :  { %v139_v31 = vadd.f32 %v138_v30, %v137_v29 }
  0xbb   :  { %v140_v32 = vrot.slane %v139_v31, 4 }
  0xbd   :  { %v141_v33 = vadd.f32 %v140_v32, %v139_v31 }
  0xbf   :  { %v142_v34 = vrot.slane %v141_v33, 2 }
  0xc1   :  { %v143_v35 = vadd.f32 %v142_v34, %v141_v33 }
  0xc3   :  { %v144_v36 = vrot.slane %v143_v35, 1 }
  0xc5   :  { %v145_v37 = vadd.f32 %v144_v36, %v143_v35 }
  0xc7   :  { %162 = vmatmul.f32.vlgmr.msra.gmra.mxu1 %v145_v37 }
 0x144   :  { %v163_v61 = vpop.f32.mrf.mxu1 }
 0x145   :  { %v164_v7 = vadd.f32 1e-05, %v163_v61 }
 0x147   :  { %1954 = vrsqrt.f32 %v164_v7  ;;  %vm172_vm1 = vweird.f32 %v164_v7 }
 0x14d   :  { %v1955_v9 = vpop.eup %1954 }
 0x14e   :  { %v167_v12 = vmul.f32 %v1955_v9, %v164_v7  ;;  %vm173_vm0 = vweird.f32 %v1955_v9 }
 0x14f   :  { %vm174_vm2 = vmor %vm172_vm1, %vm173_vm0 }
 0x150   :  { %v168_v15 = vmul.f32 %v1955_v9, %v167_v12 }
 0x152   :  { %v169_v18 = vmul.f32 0.5, %v168_v15 }
 0x154   :  { %v170_v21 = vsub.f32 1.5, %v169_v18 }
 0x156   :  { %v171_v24 = vmul.f32 %v1955_v9, %v170_v21 }
 0x158   :  { %v175_v25 = vsel %vm174_vm2, %v1955_v9, %v171_v24 }
 0x159   :  { %v176_v26 = vperm.slane %v175_v25, 0 }
 0x15b   :  { %v177_v29 = vmul.f32 %v176_v26, %v2240_v27  ;;  %v178_v30 = vmul.f32 %v176_v26, %v2243_v28 }
 0x15d   :  { %vm179_vm3 = vcmp.ge.f32.partialorder %v177_v29, 0.0  ;;  %vm180_vm4 = vcmp.ge.f32.partialorder %v178_v30, 0.0  ;;  %v181_v31 = vmul.f32 0.01, %v177_v29  ;;  %v182_v32 = vmul.f32 0.01, %v178_v30 }
 0x15f   :  { %v183_v33 = vsel %vm179_vm3, %v177_v29, %v181_v31  ;;  %v184_v34 = vsel %vm180_vm4, %v178_v30, %v182_v32  ;;  %v1883_v29 = vld [vmem:[#allocation9 + $0x78] sm:$0xff]  ;;  %v1882_v30 = vld [vmem:[#allocation9 + $0x70] sm:$0xff] }
 0x160   :  { %234 = vst [vmem:[#allocation2 + $0x1] sm:$0xff] %v183_v33  ;;  %v243_v35 = vpack.c.bf16 %v184_v34, %v183_v33  ;;  %733 = vmatpush.bf16.msra.mxu0 %v1883_v29  ;;  %v1875_v31 = vld [vmem:[#allocation9 + $0x38] sm:$0xff]  ;;  %v1881_v33 = vld [vmem:[#allocation9 + $0x68] sm:$0xff] }
 0x161   :  { %235 = vst [vmem:[#allocation2 + $0x9] sm:$0xff] %v184_v34  ;;  %v1891_v32 = vld [vmem:[#allocation9 + $0xb8] sm:$0xff]  ;;  %719 = vmatpush.bf16.msrb.mxu3 %v1875_v31  ;;  %v1874_v34 = vld [vmem:[#allocation9 + $0x30] sm:$0xff] }
 0x162   :  { %414 = vmatmul.bf16.vlgmr.msra.gmra.mxu3 %v243_v35  ;;  %747 = vmatpush.bf16.msra.mxu1 %v1891_v32  ;;  %v1890_v35 = vld [vmem:[#allocation9 + $0xb0] sm:$0xff] }
 0x164   :  { %734 = vmatpush.bf16.msra.mxu0 %v1882_v30  ;;  %v1951_v30 = vld [vmem:[%s2396_s5] ss:$0 sm:$0xff] }
 0x165   :  { %720 = vmatpush.bf16.msrb.mxu3 %v1874_v34 }
 0x166   :  { %748 = vmatpush.bf16.msra.mxu1 %v1890_v35 }
 0x167   :  { %v236_v27 = vld [vmem:[#allocation2] sm:$0xff] }
 0x168   :  { %v237_v28 = vld [vmem:[#allocation2 + $0x8] sm:$0xff]  ;;  %735 = vmatpush.bf16.msra.mxu0 %v1881_v33 }
 0x169   :  { %v240_v36 = vld [vmem:[#allocation2 + $0x2] sm:$0xff]  ;;  %v241_v37 = vld [vmem:[#allocation2 + $0xa] sm:$0xff]  ;;  %v242_v38 = vpack.c.bf16 %v237_v28, %v236_v27 }
 0x16a   :  { %v244_v39 = vpack.c.bf16 %v241_v37, %v240_v36  ;;  %v1880_v27 = vld [vmem:[#allocation9 + $0x60] sm:$0xff]  ;;  %v1873_v28 = vld [vmem:[#allocation9 + $0x28] sm:$0xff]  ;;  %v1879_v37 = vld [vmem:[#allocation9 + $0x58] sm:$0xff] }
 0x16b   :  { %400 = vmatmul.bf16.vlgmr.msra.gmra.mxu2 %v242_v38  ;;  %v1889_v36 = vld [vmem:[#allocation9 + $0xa8] sm:$0xff]  ;;  %721 = vmatpush.bf16.msrb.mxu3 %v1873_v28  ;;  %v1872_v38 = vld [vmem:[#allocation9 + $0x20] sm:$0xff] }
 0x16c   :  { %428 = vmatmul.bf16.vlgmr.msrb.gmra.mxu0 %v244_v39  ;;  %776 = vmatpush.msra.mxu2 %v2153_v0  ;;  %v1888_v39 = vld [vmem:[#allocation9 + $0xa0] sm:$0xff] }
 0x16d   :  { %736 = vmatpush.bf16.msra.mxu0 %v1880_v27  ;;  %749 = vmatpush.bf16.msra.mxu1 %v1889_v36 }
 0x16e   :  { %777 = vmatpush.msra.mxu2 %v2155_v1 }
 0x16f   :  { %722 = vmatpush.bf16.msrb.mxu3 %v1872_v38 }
 0x170   :  { %778 = vmatpush.msra.mxu2 %v2159_v2 }
 0x171   :  { %737 = vmatpush.bf16.msra.mxu0 %v1879_v37  ;;  %750 = vmatpush.bf16.msra.mxu1 %v1888_v39 }
 0x172   :  { %779 = vmatpush.msra.mxu2 %v2163_v3 }
 0x174   :  { %780 = vmatpush.msra.mxu2 %v2166_v4 }
 0x176   :  { %781 = vmatpush.msra.mxu2 %v2177_v8 }
 0x178   :  { %782 = vmatpush.msra.mxu2 %v2181_v10 }
 0x17a   :  { %783 = vmatpush.msra.mxu2 %v2185_v11 }
 0x17c   :  { %784 = vmatpush.msra.mxu2 %v2189_v13 }
 0x17e   :  { %785 = vmatpush.msra.mxu2 %v2193_v14 }
 0x180   :  { %786 = vmatpush.msra.mxu2 %v2197_v16 }
 0x182   :  { %787 = vmatpush.msra.mxu2 %v2201_v17 }
 0x184   :  { %788 = vmatpush.msra.mxu2 %v2205_v19 }
 0x186   :  { %789 = vmatpush.msra.mxu2 %v2209_v20 }
 0x188   :  { %790 = vmatpush.msra.mxu2 %v2213_v22 }
 0x18a   :  { %791 = vmatpush.msra.mxu2 %v2217_v23 }
 0x1e5   :  { %v415_v41 = vpop.f32.mrf.mxu3 }
 0x1e9   :  { %v429_v43 = vpop.f32.mrf.mxu0 }
 0x1ed   :  { %v417_v48 = vpop.f32.mrf.mxu3 }
 0x1ee   :  { %v401_v40 = vpop.f32.mrf.mxu2 }
 0x1ef   :  { %v402_v44 = vadd.f32 %v1950_v42, %v401_v40  ;;  %v1878_v40 = vld [vmem:[#allocation9 + $0x50] sm:$0xff] }
 0x1f0   :  { %738 = vmatpush.bf16.msra.mxu0 %v1878_v40 }
 0x1f1   :  { %v416_v46 = vadd.f32 %v415_v41, %v402_v44  ;;  %v431_v50 = vpop.f32.mrf.mxu0  ;;  %v1871_v41 = vld [vmem:[#allocation9 + $0x18] sm:$0xff]  ;;  %v1870_v44 = vld [vmem:[#allocation9 + $0x10] sm:$0xff] }
 0x1f2   :  { %723 = vmatpush.bf16.msrb.mxu3 %v1871_v41 }
 0x1f3   :  { %v430_v51 = vadd.f32 %v429_v43, %v416_v46  ;;  %v1877_v43 = vld [vmem:[#allocation9 + $0x48] sm:$0xff]  ;;  %v1876_v46 = vld [vmem:[#allocation9 + $0x40] sm:$0xff] }
 0x1f4   :  { %739 = vmatpush.bf16.msra.mxu0 %v1877_v43 }
 0x1f6   :  { %v403_v45 = vpop.f32.mrf.mxu2  ;;  %724 = vmatpush.bf16.msrb.mxu3 %v1870_v44 }
 0x1f7   :  { %v404_v47 = vadd.f32 %v1950_v42, %v403_v45  ;;  %v1887_v42 = vld [vmem:[#allocation9 + $0x98] sm:$0xff]  ;;  %v1886_v45 = vld [vmem:[#allocation9 + $0x90] sm:$0xff] }
 0x1f8   :  { %751 = vmatpush.bf16.msra.mxu1 %v1887_v42  ;;  %740 = vmatpush.bf16.msra.mxu0 %v1876_v46 }
 0x1f9   :  { %v418_v49 = vadd.f32 %v417_v48, %v404_v47  ;;  %v1869_v47 = vld [vmem:[#allocation9 + $0x8] sm:$0xff] }
 0x1fa   :  { %v1885_v48 = vld [vmem:[#allocation9 + $0x88] sm:$0xff]  ;;  %725 = vmatpush.bf16.msrb.mxu3 %v1869_v47 }
 0x1fb   :  { %v432_v52 = vadd.f32 %v431_v50, %v418_v49  ;;  %v1868_v50 = vld [vmem:[#allocation9] sm:$0xff] }
 0x1fc   :  { %752 = vmatpush.bf16.msra.mxu1 %v1886_v45 }
 0x1fd   :  { %v434_v53 = vadd.f32 %v432_v52, %v430_v51 }
 0x1fe   :  { %726 = vmatpush.bf16.msrb.mxu3 %v1868_v50 }
 0x1ff   :  { %v435_v54 = vrot.slane %v434_v53, 4 }
 0x200   :  { %753 = vmatpush.bf16.msra.mxu1 %v1885_v48 }
 0x201   :  { %v436_v55 = vadd.f32 %v435_v54, %v434_v53 }
 0x202   :  { %808 = vmatpush.msra.mxu3 %v2153_v0 }
 0x203   :  { %v437_v56 = vrot.slane %v436_v55, 2 }
 0x204   :  { %809 = vmatpush.msra.mxu3 %v2155_v1 }
 0x205   :  { %v438_v57 = vadd.f32 %v437_v56, %v436_v55 }
 0x206   :  { %810 = vmatpush.msra.mxu3 %v2159_v2 }
 0x207   :  { %v439_v58 = vrot.slane %v438_v57, 1 }
 0x208   :  { %811 = vmatpush.msra.mxu3 %v2163_v3 }
 0x209   :  { %v440_v59 = vadd.f32 %v439_v58, %v438_v57 }
 0x20a   :  { %812 = vmatpush.msra.mxu3 %v2166_v4 }
 0x20b   :  { %457 = vmatmul.f32.vlgmr.msrb.gmra.mxu1 %v440_v59 }
 0x20c   :  { %813 = vmatpush.msra.mxu3 %v2177_v8 }
 0x20e   :  { %814 = vmatpush.msra.mxu3 %v2181_v10 }
 0x210   :  { %815 = vmatpush.msra.mxu3 %v2185_v11 }
 0x212   :  { %816 = vmatpush.msra.mxu3 %v2189_v13 }
 0x214   :  { %817 = vmatpush.msra.mxu3 %v2193_v14 }
 0x216   :  { %818 = vmatpush.msra.mxu3 %v2197_v16 }
 0x218   :  { %819 = vmatpush.msra.mxu3 %v2201_v17 }
 0x21a   :  { %820 = vmatpush.msra.mxu3 %v2205_v19 }
 0x21c   :  { %821 = vmatpush.msra.mxu3 %v2209_v20 }
 0x21e   :  { %822 = vmatpush.msra.mxu3 %v2213_v22 }
 0x220   :  { %823 = vmatpush.msra.mxu3 %v2217_v23 }
 0x288   :  { %v458_v60 = vpop.f32.mrf.mxu1 }
 0x289   :  { %v461_v61 = vperm.slane %v458_v60, 0 }
 0x28b   :  { %v2286_v62 = vsub.f32 %v430_v51, %v461_v61  ;;  %v2288_v63 = vsub.f32 %v432_v52, %v461_v61  ;;  %v1884_v51 = vld [vmem:[#allocation9 + $0x80] sm:$0xff] }
 0x28c   :  { %754 = vmatpush.bf16.msra.mxu1 %v1884_v51 }
 0x28d   :  { %v464_v7 = vmul.f32 %v2286_v62, %v2286_v62  ;;  %v465_v9 = vmul.f32 %v2288_v63, %v2288_v63 }
 0x28f   :  { %v466_v12 = vadd.f32 %v465_v9, %v464_v7 }
 0x291   :  { %v467_v15 = vrot.slane %v466_v12, 4 }
 0x293   :  { %v468_v18 = vadd.f32 %v467_v15, %v466_v12 }
 0x295   :  { %v469_v21 = vrot.slane %v468_v18, 2 }
 0x297   :  { %v470_v24 = vadd.f32 %v469_v21, %v468_v18 }
 0x299   :  { %v471_v25 = vrot.slane %v470_v24, 1 }
 0x29b   :  { %v472_v26 = vadd.f32 %v471_v25, %v470_v24 }
 0x29d   :  { %489 = vmatmul.f32.vlgmr.msrb.gmra.mxu2 %v472_v26 }
 0x320   :  { %v490_v49 = vpop.f32.mrf.mxu2 }
 0x321   :  { %v491_v52 = vadd.f32 1e-05, %v490_v49 }
 0x323   :  { %1956 = vrsqrt.f32 %v491_v52  ;;  %vm499_vm6 = vweird.f32 %v491_v52 }
 0x329   :  { %v1957_v53 = vpop.eup %1956 }
 0x32a   :  { %v494_v54 = vmul.f32 %v1957_v53, %v491_v52  ;;  %vm500_vm5 = vweird.f32 %v1957_v53 }
 0x32b   :  { %vm501_vm7 = vmor %vm499_vm6, %vm500_vm5 }
 0x32c   :  { %v495_v55 = vmul.f32 %v1957_v53, %v494_v54 }
 0x32e   :  { %v496_v56 = vmul.f32 0.5, %v495_v55 }
 0x330   :  { %v497_v57 = vsub.f32 1.5, %v496_v56 }
 0x332   :  { %v498_v58 = vmul.f32 %v1957_v53, %v497_v57 }
 0x334   :  { %v502_v59 = vsel %vm501_vm7, %v1957_v53, %v498_v58 }
 0x335   :  { %v503_v60 = vperm.slane %v502_v59, 0 }
 0x337   :  { %v504_v61 = vmul.f32 %v503_v60, %v2286_v62  ;;  %v505_v7 = vmul.f32 %v503_v60, %v2288_v63 }
 0x339   :  { %vm506_vm8 = vcmp.ge.f32.partialorder %v504_v61, 0.0  ;;  %vm507_vm9 = vcmp.ge.f32.partialorder %v505_v7, 0.0  ;;  %v508_v9 = vmul.f32 0.01, %v504_v61  ;;  %v509_v12 = vmul.f32 0.01, %v505_v7 }
 0x33b   :  { %v510_v15 = vsel %vm506_vm8, %v504_v61, %v508_v9  ;;  %v511_v18 = vsel %vm507_vm9, %v505_v7, %v509_v12 }
 0x33c   :  { %561 = vst [vmem:[#allocation2 + $0x1] sm:$0xff] %v510_v15  ;;  %v570_v21 = vpack.c.bf16 %v511_v18, %v510_v15  ;;  %v1907_v15 = vld [vmem:[#allocation8 + $0x138] sm:$0xff] }
 0x33d   :  { %562 = vst [vmem:[#allocation2 + $0x9] sm:$0xff] %v511_v18  ;;  %1070 = vmatpush.bf16.msrb.mxu1 %v1907_v15  ;;  %v1906_v18 = vld [vmem:[#allocation8 + $0x130] sm:$0xff] }
 0x33e   :  { %741 = vmatmul.bf16.vlgmr.msra.gmra.mxu0 %v570_v21  ;;  %v1899_v21 = vld [vmem:[#allocation8 + $0xf8] sm:$0xff] }
 0x33f   :  { %1056 = vmatpush.bf16.msrb.mxu0 %v1899_v21 }
 0x341   :  { %1071 = vmatpush.bf16.msrb.mxu1 %v1906_v18 }
 0x343   :  { %v563_v62 = vld [vmem:[#allocation2] sm:$0xff] }
 0x344   :  { %v564_v63 = vld [vmem:[#allocation2 + $0x8] sm:$0xff] }
 0x345   :  { %v567_v24 = vld [vmem:[#allocation2 + $0x2] sm:$0xff]  ;;  %v568_v25 = vld [vmem:[#allocation2 + $0xa] sm:$0xff]  ;;  %v569_v26 = vpack.c.bf16 %v564_v63, %v563_v62 }
 0x346   :  { %v571_v29 = vpack.c.bf16 %v568_v25, %v567_v24  ;;  %v1915_v62 = vld [vmem:[#allocation8 + $0x178] sm:$0xff]  ;;  %v1905_v63 = vld [vmem:[#allocation8 + $0x128] sm:$0xff]  ;;  %v1898_v24 = vld [vmem:[#allocation8 + $0xf0] sm:$0xff] }
 0x347   :  { %727 = vmatmul.bf16.vlgmr.msrb.gmra.mxu3 %v569_v26  ;;  %1084 = vmatpush.bf16.msrb.mxu2 %v1915_v62  ;;  %v1914_v25 = vld [vmem:[#allocation8 + $0x170] sm:$0xff]  ;;  %v1904_v26 = vld [vmem:[#allocation8 + $0x120] sm:$0xff] }
 0x348   :  { %755 = vmatmul.bf16.vlgmr.msra.gmra.mxu1 %v571_v29  ;;  %1105 = vmatpush.msrb.mxu3 %v2153_v0  ;;  %v1897_v29 = vld [vmem:[#allocation8 + $0xe8] sm:$0xff] }
 0x349   :  { %1072 = vmatpush.bf16.msrb.mxu1 %v1905_v63  ;;  %1057 = vmatpush.bf16.msrb.mxu0 %v1898_v24 }
 0x34a   :  { %1106 = vmatpush.msrb.mxu3 %v2155_v1 }
 0x34b   :  { %1085 = vmatpush.bf16.msrb.mxu2 %v1914_v25 }
 0x34c   :  { %1107 = vmatpush.msrb.mxu3 %v2159_v2 }
 0x34d   :  { %1073 = vmatpush.bf16.msrb.mxu1 %v1904_v26  ;;  %1058 = vmatpush.bf16.msrb.mxu0 %v1897_v29 }
 0x34e   :  { %1108 = vmatpush.msrb.mxu3 %v2163_v3 }
 0x350   :  { %1109 = vmatpush.msrb.mxu3 %v2166_v4 }
 0x352   :  { %1110 = vmatpush.msrb.mxu3 %v2177_v8 }
 0x354   :  { %1111 = vmatpush.msrb.mxu3 %v2181_v10 }
 0x356   :  { %1112 = vmatpush.msrb.mxu3 %v2185_v11 }
 0x358   :  { %1113 = vmatpush.msrb.mxu3 %v2189_v13 }
 0x35a   :  { %1114 = vmatpush.msrb.mxu3 %v2193_v14 }
 0x35c   :  { %1115 = vmatpush.msrb.mxu3 %v2197_v16 }
 0x35e   :  { %1116 = vmatpush.msrb.mxu3 %v2201_v17 }
 0x360   :  { %1117 = vmatpush.msrb.mxu3 %v2205_v19 }
 0x362   :  { %1118 = vmatpush.msrb.mxu3 %v2209_v20 }
 0x364   :  { %1119 = vmatpush.msrb.mxu3 %v2213_v22 }
 0x366   :  { %1120 = vmatpush.msrb.mxu3 %v2217_v23 }
 0x3bb   :  { %v742_v31 = vpop.f32.mrf.mxu0 }
 0x3c3   :  { %v744_v37 = vpop.f32.mrf.mxu0 }
 0x3c5   :  { %v756_v34 = vpop.f32.mrf.mxu1 }
 0x3ca   :  { %v728_v32 = vpop.f32.mrf.mxu3 }
 0x3cb   :  { %v729_v33 = vadd.f32 %v1951_v30, %v728_v32  ;;  %v1896_v32 = vld [vmem:[#allocation8 + $0xe0] sm:$0xff] }
 0x3cc   :  { %1059 = vmatpush.bf16.msrb.mxu0 %v1896_v32 }
 0x3cd   :  { %v743_v35 = vadd.f32 %v742_v31, %v729_v33  ;;  %v758_v40 = vpop.f32.mrf.mxu1  ;;  %v1903_v31 = vld [vmem:[#allocation8 + $0x118] sm:$0xff]  ;;  %v1912_v33 = vld [vmem:[#allocation8 + $0x160] sm:$0xff] }
 0x3ce   :  { %1074 = vmatpush.bf16.msrb.mxu1 %v1903_v31 }
 0x3cf   :  { %v757_v27 = vadd.f32 %v756_v34, %v743_v35  ;;  %v1902_v34 = vld [vmem:[#allocation8 + $0x110] sm:$0xff]  ;;  %v1895_v35 = vld [vmem:[#allocation8 + $0xd8] sm:$0xff] }
 0x3d0   :  { %1060 = vmatpush.bf16.msrb.mxu0 %v1895_v35 }
 0x3d1   :  { %v761_v38 = vadd.f32 %v757_v27, %v2168_v5  ;;  %v1911_v27 = vld [vmem:[#allocation8 + $0x158] sm:$0xff] }
 0x3d2   :  { %v730_v28 = vpop.f32.mrf.mxu3  ;;  %1075 = vmatpush.bf16.msrb.mxu1 %v1902_v34 }
 0x3d3   :  { %v731_v36 = vadd.f32 %v1951_v30, %v730_v28  ;;  %v765_v42 = vmul.f32 0.01, %v761_v38  ;;  %vm763_vm10 = vcmp.ge.f32.partialorder %v761_v38, 0.0  ;;  %v1913_v30 = vld [vmem:[#allocation8 + $0x168] sm:$0xff] }
 0x3d4   :  { %1086 = vmatpush.bf16.msrb.mxu2 %v1913_v30  ;;  %v1901_v28 = vld [vmem:[#allocation8 + $0x108] sm:$0xff] }
 0x3d5   :  { %v745_v39 = vadd.f32 %v744_v37, %v731_v36  ;;  %v2333_v45 = vsel %vm763_vm10, %v761_v38, %v765_v42  ;;  %v1894_v36 = vld [vmem:[#allocation8 + $0xd0] sm:$0xff]  ;;  %v1900_v38 = vld [vmem:[#allocation8 + $0x100] sm:$0xff] }
 0x3d6   :  { %1076 = vmatpush.bf16.msrb.mxu1 %v1901_v28  ;;  %v1910_v37 = vld [vmem:[#allocation8 + $0x150] sm:$0xff]  ;;  %1061 = vmatpush.bf16.msrb.mxu0 %v1894_v36  ;;  %v1892_v42 = vld [vmem:[#allocation8 + $0xc0] sm:$0xff] }
 0x3d7   :  { %v759_v41 = vadd.f32 %v758_v40, %v745_v39  ;;  %v1893_v39 = vld [vmem:[#allocation8 + $0xc8] sm:$0xff] }
 0x3d8   :  { %1087 = vmatpush.bf16.msrb.mxu2 %v1912_v33  ;;  %v1909_v40 = vld [vmem:[#allocation8 + $0x148] sm:$0xff] }
 0x3d9   :  { %v762_v43 = vadd.f32 %v759_v41, %v2170_v6 }
 0x3da   :  { %1077 = vmatpush.bf16.msrb.mxu1 %v1900_v38  ;;  %1062 = vmatpush.bf16.msrb.mxu0 %v1893_v39  ;;  %v1930_v38 = vld [vmem:[#allocation9 + $0x130] sm:$0xff]  ;;  %v1923_v39 = vld [vmem:[#allocation9 + $0xf8] sm:$0xff] }
 0x3db   :  { %vm764_vm11 = vcmp.ge.f32.partialorder %v762_v43, 0.0  ;;  %v766_v44 = vmul.f32 0.01, %v762_v43 }
 0x3dc   :  { %1088 = vmatpush.bf16.msrb.mxu2 %v1911_v27 }
 0x3dd   :  { %v2335_v46 = vsel %vm764_vm11, %v762_v43, %v766_v44  ;;  %v1908_v43 = vld [vmem:[#allocation8 + $0x140] sm:$0xff] }
 0x3de   :  { %v769_v47 = vadd.f32 %v2335_v46, %v2333_v45  ;;  %1063 = vmatpush.bf16.msrb.mxu0 %v1892_v42  ;;  %1385 = vmatpush.bf16.msra.mxu1 %v1923_v39  ;;  %v1922_v42 = vld [vmem:[#allocation9 + $0xf0] sm:$0xff] }
 0x3e0   :  { %v770_v48 = vrot.slane %v769_v47, 4  ;;  %1089 = vmatpush.bf16.msrb.mxu2 %v1910_v37  ;;  %v1931_v37 = vld [vmem:[#allocation9 + $0x138] sm:$0xff] }
 0x3e2   :  { %v771_v49 = vadd.f32 %v770_v48, %v769_v47  ;;  %1137 = vmatpush.msra.mxu0 %v2153_v0  ;;  %1386 = vmatpush.bf16.msra.mxu1 %v1922_v42 }
 0x3e4   :  { %v772_v50 = vrot.slane %v771_v49, 2  ;;  %1090 = vmatpush.bf16.msrb.mxu2 %v1909_v40  ;;  %1138 = vmatpush.msra.mxu0 %v2155_v1  ;;  %v1939_v40 = vld [vmem:[#allocation9 + $0x178] sm:$0xff] }
 0x3e6   :  { %v773_v5 = vadd.f32 %v772_v50, %v771_v49  ;;  %1139 = vmatpush.msra.mxu0 %v2159_v2 }
 0x3e8   :  { %v774_v51 = vrot.slane %v773_v5, 1  ;;  %1091 = vmatpush.bf16.msrb.mxu2 %v1908_v43  ;;  %1140 = vmatpush.msra.mxu0 %v2163_v3  ;;  %v1938_v43 = vld [vmem:[#allocation9 + $0x170] sm:$0xff] }
 0x3ea   :  { %v775_v52 = vadd.f32 %v774_v51, %v773_v5  ;;  %1141 = vmatpush.msra.mxu0 %v2166_v4 }
 0x3ec   :  { %792 = vmatmul.f32.vlgmr.msra.gmra.mxu2 %v775_v52  ;;  %1142 = vmatpush.msra.mxu0 %v2177_v8 }
 0x3ed   :  { %1399 = vmatpush.bf16.msra.mxu2 %v1931_v37 }
 0x3ee   :  { %1143 = vmatpush.msra.mxu0 %v2181_v10 }
 0x3f0   :  { %1144 = vmatpush.msra.mxu0 %v2185_v11 }
 0x3f1   :  { %1400 = vmatpush.bf16.msra.mxu2 %v1930_v38 }
 0x3f2   :  { %1145 = vmatpush.msra.mxu0 %v2189_v13 }
 0x3f4   :  { %1146 = vmatpush.msra.mxu0 %v2193_v14 }
 0x3f6   :  { %1147 = vmatpush.msra.mxu0 %v2197_v16 }
 0x3f8   :  { %1148 = vmatpush.msra.mxu0 %v2201_v17 }
 0x3fa   :  { %1149 = vmatpush.msra.mxu0 %v2205_v19  ;;  %v1952_v19 = vld [vmem:[%s2394_s3 + $0x1] ss:$0 sm:$0xff] }
 0x3fc   :  { %1150 = vmatpush.msra.mxu0 %v2209_v20 }
 0x3fe   :  { %1151 = vmatpush.msra.mxu0 %v2213_v22 }
 0x400   :  { %1152 = vmatpush.msra.mxu0 %v2217_v23 }
 0x46f   :  { %v793_v53 = vpop.f32.mrf.mxu2 }
 0x470   :  { %v796_v54 = vperm.slane %v793_v53, 0 }
 0x472   :  { %v2340_v6 = vsub.f32 %v2333_v45, %v796_v54  ;;  %v2343_v55 = vsub.f32 %v2335_v46, %v796_v54 }
 0x474   :  { %v799_v56 = vmul.f32 %v2340_v6, %v2340_v6  ;;  %v800_v57 = vmul.f32 %v2343_v55, %v2343_v55 }
 0x476   :  { %v801_v58 = vadd.f32 %v800_v57, %v799_v56 }
 0x478   :  { %v802_v59 = vrot.slane %v801_v58, 4 }
 0x47a   :  { %v803_v60 = vadd.f32 %v802_v59, %v801_v58 }
 0x47c   :  { %v804_v61 = vrot.slane %v803_v60, 2 }
 0x47e   :  { %v805_v7 = vadd.f32 %v804_v61, %v803_v60 }
 0x480   :  { %v806_v9 = vrot.slane %v805_v7, 1 }
 0x482   :  { %v807_v12 = vadd.f32 %v806_v9, %v805_v7 }
 0x484   :  { %824 = vmatmul.f32.vlgmr.msra.gmra.mxu3 %v807_v12 }
 0x485   :  { %1413 = vmatpush.bf16.msra.mxu3 %v1939_v40 }
 0x489   :  { %1414 = vmatpush.bf16.msra.mxu3 %v1938_v43 }
 0x507   :  { %v825_v41 = vpop.f32.mrf.mxu3 }
 0x508   :  { %v826_v44 = vadd.f32 1e-05, %v825_v41  ;;  %v1929_v41 = vld [vmem:[#allocation9 + $0x128] sm:$0xff] }
 0x509   :  { %1401 = vmatpush.bf16.msra.mxu2 %v1929_v41 }
 0x50a   :  { %1958 = vrsqrt.f32 %v826_v44  ;;  %vm834_vm13 = vweird.f32 %v826_v44 }
 0x510   :  { %v1959_v47 = vpop.eup %1958 }
 0x511   :  { %v829_v48 = vmul.f32 %v1959_v47, %v826_v44  ;;  %vm835_vm12 = vweird.f32 %v1959_v47  ;;  %v1928_v44 = vld [vmem:[#allocation9 + $0x120] sm:$0xff] }
 0x512   :  { %vm836_vm14 = vmor %vm834_vm13, %vm835_vm12  ;;  %1402 = vmatpush.bf16.msra.mxu2 %v1928_v44 }
 0x513   :  { %v830_v49 = vmul.f32 %v1959_v47, %v829_v48  ;;  %v1937_v48 = vld [vmem:[#allocation9 + $0x168] sm:$0xff] }
 0x514   :  { %1415 = vmatpush.bf16.msra.mxu3 %v1937_v48 }
 0x515   :  { %v831_v50 = vmul.f32 0.5, %v830_v49  ;;  %v1927_v49 = vld [vmem:[#allocation9 + $0x118] sm:$0xff] }
 0x516   :  { %1403 = vmatpush.bf16.msra.mxu2 %v1927_v49 }
 0x517   :  { %v832_v5 = vsub.f32 1.5, %v831_v50  ;;  %v1920_v50 = vld [vmem:[#allocation9 + $0xe0] sm:$0xff] }
 0x519   :  { %v833_v51 = vmul.f32 %v1959_v47, %v832_v5  ;;  %v1936_v5 = vld [vmem:[#allocation9 + $0x160] sm:$0xff] }
 0x51a   :  { %1416 = vmatpush.bf16.msra.mxu3 %v1936_v5 }
 0x51b   :  { %v837_v0 = vsel %vm836_vm14, %v1959_v47, %v833_v51  ;;  %v1921_v47 = vld [vmem:[#allocation9 + $0xe8] sm:$0xff]  ;;  %v1926_v51 = vld [vmem:[#allocation9 + $0x110] sm:$0xff] }
 0x51c   :  { %v838_v1 = vperm.slane %v837_v0, 0  ;;  %1387 = vmatpush.bf16.msra.mxu1 %v1921_v47  ;;  %1404 = vmatpush.bf16.msra.mxu2 %v1926_v51  ;;  %v1919_v0 = vld [vmem:[#allocation9 + $0xd8] sm:$0xff] }
 0x51e   :  { %v839_v2 = vmul.f32 %v838_v1, %v2340_v6  ;;  %v840_v3 = vmul.f32 %v838_v1, %v2343_v55  ;;  %v1935_v1 = vld [vmem:[#allocation9 + $0x158] sm:$0xff] }
 0x51f   :  { %1417 = vmatpush.bf16.msra.mxu3 %v1935_v1 }
 0x520   :  { %vm841_vm15 = vcmp.ge.f32.partialorder %v839_v2, 0.0  ;;  %vm842_vm0 = vcmp.ge.f32.partialorder %v840_v3, 0.0  ;;  %v843_v4 = vmul.f32 0.01, %v839_v2  ;;  %v844_v8 = vmul.f32 0.01, %v840_v3  ;;  %1388 = vmatpush.bf16.msra.mxu1 %v1920_v50 }
 0x522   :  { %v845_v10 = vsel %vm841_vm15, %v839_v2, %v843_v4  ;;  %v846_v52 = vsel %vm842_vm0, %v840_v3, %v844_v8  ;;  %v1925_v2 = vld [vmem:[#allocation9 + $0x108] sm:$0xff]  ;;  %v1918_v3 = vld [vmem:[#allocation9 + $0xd0] sm:$0xff]  ;;  %v1924_v8 = vld [vmem:[#allocation9 + $0x100] sm:$0xff] }
 0x523   :  { %898 = vst [vmem:[#allocation2 + $0x1] sm:$0xff] %v845_v10  ;;  %v907_v11 = vpack.c.bf16 %v846_v52, %v845_v10  ;;  %1405 = vmatpush.bf16.msra.mxu2 %v1925_v2  ;;  %v1934_v4 = vld [vmem:[#allocation9 + $0x150] sm:$0xff]  ;;  %v1917_v10 = vld [vmem:[#allocation9 + $0xc8] sm:$0xff] }
 0x524   :  { %899 = vst [vmem:[#allocation2 + $0x9] sm:$0xff] %v846_v52  ;;  %1389 = vmatpush.bf16.msra.mxu1 %v1919_v0  ;;  %1418 = vmatpush.bf16.msra.mxu3 %v1934_v4  ;;  %v1933_v52 = vld [vmem:[#allocation9 + $0x148] sm:$0xff] }
 0x525   :  { %1078 = vmatmul.bf16.vlgmr.msrb.gmra.mxu1 %v907_v11 }
 0x527   :  { %1406 = vmatpush.bf16.msra.mxu2 %v1924_v8 }
 0x528   :  { %1390 = vmatpush.bf16.msra.mxu1 %v1918_v3  ;;  %1419 = vmatpush.bf16.msra.mxu3 %v1933_v52 }
 0x52a   :  { %v900_v13 = vld [vmem:[#allocation2] sm:$0xff] }
 0x52b   :  { %v901_v14 = vld [vmem:[#allocation2 + $0x8] sm:$0xff] }
 0x52c   :  { %v904_v53 = vld [vmem:[#allocation2 + $0x2] sm:$0xff]  ;;  %v905_v16 = vld [vmem:[#allocation2 + $0xa] sm:$0xff]  ;;  %v906_v54 = vpack.c.bf16 %v901_v14, %v900_v13  ;;  %1391 = vmatpush.bf16.msra.mxu1 %v1917_v10 }
 0x52d   :  { %v908_v6 = vpack.c.bf16 %v905_v16, %v904_v53  ;;  %v1916_v13 = vld [vmem:[#allocation9 + $0xc0] sm:$0xff] }
 0x52e   :  { %1064 = vmatmul.bf16.vlgmr.msrb.gmra.mxu0 %v906_v54  ;;  %v1932_v14 = vld [vmem:[#allocation9 + $0x140] sm:$0xff] }
 0x52f   :  { %1092 = vmatmul.bf16.vlgmr.msrb.gmra.mxu2 %v908_v6  ;;  %1420 = vmatpush.bf16.msra.mxu3 %v1932_v14 }
 0x530   :  { %1392 = vmatpush.bf16.msra.mxu1 %v1916_v13 }
 0x5a2   :  { %v1079_v55 = vpop.f32.mrf.mxu1 }
 0x5aa   :  { %v1081_v58 = vpop.f32.mrf.mxu1 }
 0x5ab   :  { %v1065_v17 = vpop.f32.mrf.mxu0 }
 0x5ac   :  { %v1066_v57 = vadd.f32 %v1952_v19, %v1065_v17 }
 0x5ae   :  { %v1080_v59 = vadd.f32 %v1079_v55, %v1066_v57 }
 0x5b2   :  { %v1093_v56 = vpop.f32.mrf.mxu2 }
 0x5b3   :  { %v1067_v20 = vpop.f32.mrf.mxu0  ;;  %v1094_v61 = vadd.f32 %v1093_v56, %v1080_v59 }
 0x5b4   :  { %v1068_v22 = vadd.f32 %v1952_v19, %v1067_v20 }
 0x5b6   :  { %v1082_v23 = vadd.f32 %v1081_v58, %v1068_v22 }
 0x5ba   :  { %v1095_v60 = vpop.f32.mrf.mxu2 }
 0x5bb   :  { %v1096_v7 = vadd.f32 %v1095_v60, %v1082_v23 }
 0x5bd   :  { %v1098_v9 = vadd.f32 %v1096_v7, %v1094_v61 }
 0x5bf   :  { %v1099_v12 = vrot.slane %v1098_v9, 4 }
 0x5c1   :  { %v1100_v15 = vadd.f32 %v1099_v12, %v1098_v9 }
 0x5c3   :  { %v1101_v18 = vrot.slane %v1100_v15, 2 }
 0x5c5   :  { %v1102_v21 = vadd.f32 %v1101_v18, %v1100_v15 }
 0x5c7   :  { %v1103_v62 = vrot.slane %v1102_v21, 1 }
 0x5c9   :  { %v1104_v63 = vadd.f32 %v1103_v62, %v1102_v21  ;;  %v1953_v62 = vld [vmem:[%s2396_s5 + $0x1] ss:$0 sm:$0xff]  ;;  %s2099_s5 = smov [#allocation11]  }
 0x5ca   :  { %s1441_s24 = sshll.u32 %s2099_s5, 4  ;;  %s1442_s24 = int_to_ptr.vmem [resolvable:$true] %s1441_s24 }
 0x5cb   :  { %1121 = vmatmul.f32.vlgmr.msrb.gmra.mxu3 %v1104_v63 }
 0x64e   :  { %v1122_v24 = vpop.f32.mrf.mxu3 }
 0x64f   :  { %v1125_v25 = vperm.slane %v1122_v24, 0 }
 0x651   :  { %v2370_v26 = vsub.f32 %v1094_v61, %v1125_v25  ;;  %v2372_v29 = vsub.f32 %v1096_v7, %v1125_v25 }
 0x653   :  { %v1128_v30 = vmul.f32 %v2370_v26, %v2370_v26  ;;  %v1129_v31 = vmul.f32 %v2372_v29, %v2372_v29 }
 0x655   :  { %v1130_v32 = vadd.f32 %v1129_v31, %v1128_v30 }
 0x657   :  { %v1131_v33 = vrot.slane %v1130_v32, 4 }
 0x659   :  { %v1132_v34 = vadd.f32 %v1131_v33, %v1130_v32 }
 0x65b   :  { %v1133_v35 = vrot.slane %v1132_v34, 2 }
 0x65d   :  { %v1134_v27 = vadd.f32 %v1133_v35, %v1132_v34 }
 0x65f   :  { %v1135_v28 = vrot.slane %v1134_v27, 1 }
 0x661   :  { %v1136_v36 = vadd.f32 %v1135_v28, %v1134_v27 }
 0x663   :  { %1153 = vmatmul.f32.vlgmr.msra.gmra.mxu0 %v1136_v36 }
 0x6e0   :  { %v1154_v11 = vpop.f32.mrf.mxu0 }
 0x6e1   :  { %v1155_v53 = vadd.f32 1e-05, %v1154_v11 }
 0x6e3   :  { %1960 = vrsqrt.f32 %v1155_v53  ;;  %vm1163_vm2 = vweird.f32 %v1155_v53 }
 0x6e9   :  { %v1961_v16 = vpop.eup %1960 }
 0x6ea   :  { %v1158_v54 = vmul.f32 %v1961_v16, %v1155_v53  ;;  %vm1164_vm1 = vweird.f32 %v1961_v16 }
 0x6eb   :  { %vm1165_vm3 = vmor %vm1163_vm2, %vm1164_vm1 }
 0x6ec   :  { %v1159_v6 = vmul.f32 %v1961_v16, %v1158_v54 }
 0x6ee   :  { %v1160_v17 = vmul.f32 0.5, %v1159_v6 }
 0x6f0   :  { %v1161_v55 = vsub.f32 1.5, %v1160_v17 }
 0x6f2   :  { %v1162_v19 = vmul.f32 %v1961_v16, %v1161_v55 }
 0x6f4   :  { %v1166_v56 = vsel %vm1165_vm3, %v1961_v16, %v1162_v19 }
 0x6f5   :  { %v1167_v20 = vperm.slane %v1166_v56, 0 }
 0x6f7   :  { %v1168_v57 = vmul.f32 %v1167_v20, %v2370_v26  ;;  %v1169_v22 = vmul.f32 %v1167_v20, %v2372_v29 }
 0x6f9   :  { %vm1170_vm4 = vcmp.ge.f32.partialorder %v1168_v57, 0.0  ;;  %vm1171_vm5 = vcmp.ge.f32.partialorder %v1169_v22, 0.0  ;;  %v1172_v58 = vmul.f32 0.01, %v1168_v57  ;;  %v1173_v59 = vmul.f32 0.01, %v1169_v22 }
 0x6fb   :  { %v1174_v23 = vsel %vm1170_vm4, %v1168_v57, %v1172_v58  ;;  %v1175_v60 = vsel %vm1171_vm5, %v1169_v22, %v1173_v59 }
 0x6fc   :  { %1227 = vst [vmem:[#allocation2 + $0x1] sm:$0xff] %v1174_v23  ;;  %v1236_v61 = vpack.c.bf16 %v1175_v60, %v1174_v23 }
 0x6fd   :  { %1228 = vst [vmem:[#allocation2 + $0x9] sm:$0xff] %v1175_v60 }
 0x6fe   :  { %1407 = vmatmul.bf16.vlgmr.msra.gmra.mxu2 %v1236_v61 }
 0x703   :  { %v1229_v7 = vld [vmem:[#allocation2] sm:$0xff] }
 0x704   :  { %v1230_v9 = vld [vmem:[#allocation2 + $0x8] sm:$0xff] }
 0x705   :  { %v1233_v12 = vld [vmem:[#allocation2 + $0x2] sm:$0xff]  ;;  %v1234_v15 = vld [vmem:[#allocation2 + $0xa] sm:$0xff]  ;;  %v1235_v18 = vpack.c.bf16 %v1230_v9, %v1229_v7 }
 0x706   :  { %v1237_v21 = vpack.c.bf16 %v1234_v15, %v1233_v12 }
 0x707   :  { %1393 = vmatmul.bf16.vlgmr.msra.gmra.mxu1 %v1235_v18 }
 0x708   :  { %1421 = vmatmul.bf16.vlgmr.msra.gmra.mxu3 %v1237_v21 }
 0x781   :  { %v1408_v25 = vpop.f32.mrf.mxu2 }
 0x784   :  { %v1394_v63 = vpop.f32.mrf.mxu1 }
 0x785   :  { %v1395_v24 = vadd.f32 %v1953_v62, %v1394_v63 }
 0x787   :  { %v1409_v26 = vadd.f32 %v1408_v25, %v1395_v24 }
 0x789   :  { %v1410_v35 = vpop.f32.mrf.mxu2 }
 0x78b   :  { %v1422_v29 = vpop.f32.mrf.mxu3 }
 0x78c   :  { %v1423_v30 = vadd.f32 %v1422_v29, %v1409_v26  ;;  %v1396_v31 = vpop.f32.mrf.mxu1 }
 0x78d   :  { %v1397_v33 = vadd.f32 %v1953_v62, %v1396_v31 }
 0x78e   :  { %v1427_v32 = vadd.f32 %v1423_v30, %v2333_v45 }
 0x78f   :  { %v1411_v27 = vadd.f32 %v1410_v35, %v1397_v33 }
 0x790   :  { %vm1429_vm6 = vcmp.ge.f32.partialorder %v1427_v32, 0.0  ;;  %v1431_v34 = vmul.f32 0.01, %v1427_v32 }
 0x792   :  { %v1433_v28 = vsel %vm1429_vm6, %v1427_v32, %v1431_v34 }
 0x793   :  { %v1424_v36 = vpop.f32.mrf.mxu3  ;;  %1435 = vst [vmem:[#allocation11] sm:$0xff] %v1433_v28 }
 0x794   :  { %v1425_v37 = vadd.f32 %v1424_v36, %v1411_v27 }
 0x796   :  { %v1428_v38 = vadd.f32 %v1425_v37, %v2335_v46 }
 0x798   :  { %vm1430_vm7 = vcmp.ge.f32.partialorder %v1428_v38, 0.0  ;;  %v1432_v39 = vmul.f32 0.01, %v1428_v38 }
 0x79a   :  { %v1434_v45 = vsel %vm1430_vm7, %v1428_v38, %v1432_v39 }
 0x79b   :  { %1436 = vst [vmem:[#allocation11 + $0x8] sm:$0xff] %v1434_v45 }
 0x79c   :  { %1449 = dma.vmem_to_hbm [thread:$0]  %s1442_s24, 256, %s1444_s27, [#allocation5], %s2091_s29, %s2091_s29, %s2092_s30  }
 0x79d   :  { %2088 = dma.done.wait [#allocation5], 256  }
 0x79e   :  { %2089 = vsyncadd [#allocation5], 4294967040 }
 0x79f   :  { %1454 = vsyncpa [#allocation4], 1 }
 0x7a0   :  { %1455 = vsyncpa [#allocation7], 1 }
 0x7a1   :  { %1456 = vsyncpa [#allocation10], 1 }
 0x7a2   :  { %1457 = vsyncpa [#allocation5], 1 }

</bundles_post_ra>
